<compile_context>
chip_gen: v7x
topology: tpu7x:2x2x1
jax: 0.10.0
libtpu: 0.0.40
codegen_flags: <defaults>
</compile_context>

<pallas_src>
import math

import jax
import jax.numpy as jnp
from jax import lax
from jax.experimental import pallas as pl
from jax.experimental.pallas import tpu as pltpu

# --------------------------------------------------------------------------
# config (mirrors cfg['MODEL']['Conceptualizing_Alignment'])
# --------------------------------------------------------------------------
INPUT_DIM = 512
NUM_CONCEPT = 4
CONCEPT_DIM = 64
SAMPLE_NUM = 2
NUM_HEADS = 8
MLP_RATIO = 4

assert 2 * MLP_RATIO * CONCEPT_DIM == INPUT_DIM, "weight packing assumes 2*mlp_hidden == input_dim"


# --------------------------------------------------------------------------
# fused per-modality kernel
#   grid axis of size 2 = [ev path, txt path], marked "parallel"
# --------------------------------------------------------------------------
def make_fused_kernel(B, T):
    N, C, H, Din = NUM_CONCEPT, CONCEPT_DIM, NUM_HEADS, INPUT_DIM
    Hd = MLP_RATIO * C                 # 256
    BT = B * T
    BN = B * N                         # rows ordered (n, b): row = n*B + b
    hd = C // H
    HBN = H * BN
    scale = hd ** -0.5
    f32, bf16 = jnp.float32, jnp.bfloat16

    def quick_gelu(x):
        return x * (1.0 / (1.0 + jnp.exp(-1.702 * x)))

    def gelu(x):
        # tanh approximation of torch.nn.GELU (max abs deviation ~3e-3)
        return 0.5 * x * (1.0 + jnp.tanh(0.7978845608028654 * (x + 0.044715 * x * x * x)))

    def kernel(x_ref, mavg_ref, wa_ref, wb_ref, fc_ref, qkv_ref, proj_ref,
               vec_ref, mask_ref, out_ref):
        # ---- unpack the packed bias / norm vectors (one DMA) ----------------
        vec = vec_ref[...]
        b1 = vec[0:1, :Din]
        mlp_b1 = vec[1:2, :2 * Hd]
        b2 = vec[2:3, :N * C]
        fc_b = vec[3:4, :C]
        n1_g = vec[4:5, :C]
        n1_b = vec[5:6, :C]
        proj_b = vec[6:7, :2 * C]
        n23_g = vec[7:8, :2 * C]
        n23_b = vec[8:9, :2 * C]
        mlp_b2 = vec[9:10, :2 * C]
        sgn = vec[10:11, :2 * C]                       # +1 on mu lanes, -1 on ls lanes

        # ---- precomputed attention masks (one shared DMA) -------------------
        masks = mask_ref[...]
        head_sel = masks[0:HBN, :C]                    # (HBN, C)
        grp = masks[HBN:2 * HBN, :HBN]                 # (HBN, HBN)  same-head groups
        smask = masks[2 * HBN:2 * HBN + BN, :HBN]      # (BN, HBN)   cross-batch -> -1e30

        # ---- Concept_Project_function: linear1 -> QuickGELU -----------------
        x = x_ref[...]                                                    # (BT, Din) f32
        h = jnp.dot(x.astype(bf16), wa_ref[0:Din, :],
                    preferred_element_type=f32) + b1
        h = quick_gelu(h)

        # ---- mean over T (averaging matrix; identity for txt), linear2 ------
        h_avg = jnp.dot(mavg_ref[...], h, preferred_element_type=f32)     # (B, Din)
        proj = jnp.dot(h_avg.astype(bf16), wb_ref[:, 0:N * C],
                       preferred_element_type=f32) + b2                    # (B, N*C)

        # ---- (B, N*C) -> (BN, C), rows ordered (n, b) ------------------------
        xin = jnp.concatenate([proj[:, n * C:(n + 1) * C] for n in range(N)],
                              axis=0)                                       # (BN, C)

        # ---- DisTrans: fc -> GELU -> LayerNorm(norm1) ------------------------
        h1 = jnp.dot(xin.astype(bf16), fc_ref[...],
                     preferred_element_type=f32) + fc_b
        h1 = gelu(h1)
        mu1 = jnp.mean(h1, axis=-1, keepdims=True)
        var1 = jnp.mean(jnp.square(h1 - mu1), axis=-1, keepdims=True)
        xn = (h1 - mu1) * lax.rsqrt(var1 + 1e-5) * n1_g + n1_b              # (BN, C)

        # ---- DisAttention: fused qkv + block-diagonal head expansion ---------
        qkv = jnp.dot(xn.astype(bf16), qkv_ref[...],
                      preferred_element_type=f32)                           # (BN, 3C)
        q = qkv[:, 0:C]
        k = qkv[:, C:2 * C]
        v = qkv[:, 2 * C:3 * C]
        k_big = (jnp.concatenate([k] * H, axis=0) * head_sel).astype(bf16)  # (HBN, C)
        v_big = (jnp.concatenate([v] * H, axis=0) * head_sel).astype(bf16)  # (HBN, C)

        s = lax.dot_general(q.astype(bf16), k_big, (((1,), (1,)), ((), ())),
                            preferred_element_type=f32) * scale + smask     # (BN, HBN)
        s = s - jnp.max(s, axis=-1, keepdims=True)
        p = jnp.exp(s)                                                       # masked -> 0
        denom = jnp.dot(p, grp, preferred_element_type=f32)                  # per-head sums
        attn = p / denom
        o = jnp.dot(attn.astype(bf16), v_big, preferred_element_type=f32)    # (BN, C)

        # ---- fused mu/logsigma projection -> lane-dense [mu | ls] slab -------
        ml = jnp.dot(o.astype(bf16), proj_ref[...],
                     preferred_element_type=f32) + proj_b                    # (BN, 2C)
        # residual with the ORIGINAL x only on the mu half (as in DisTrans)
        ml = ml + jnp.concatenate([xin, jnp.zeros((BN, C), f32)], axis=-1)

        # ---- segmented LayerNorm over the two 64-lane halves (norm2 | norm3) -
        mf = jnp.mean(ml, axis=-1, keepdims=True)
        md = jnp.mean(ml * sgn, axis=-1, keepdims=True)
        seg_mean = mf + sgn * md
        xc = ml - seg_mean
        xc2 = xc * xc
        vf = jnp.mean(xc2, axis=-1, keepdims=True)
        vd = jnp.mean(xc2 * sgn, axis=-1, keepdims=True)
        seg_var = vf + sgn * vd
        xm = xc * lax.rsqrt(seg_var + 1e-5) * n23_g + n23_b                  # (BN, 2C)

        # ---- fused residual MLPs (block-diagonal mu_mlp | logsig_mlp) --------
        hmid = jnp.dot(xm.astype(bf16), wa_ref[Din:Din + 2 * C, :],
                       preferred_element_type=f32) + mlp_b1                  # (BN, 2*Hd)
        hmid = gelu(hmid)
        mlp_out = jnp.dot(hmid.astype(bf16), wb_ref[:, N * C:N * C + 2 * C],
                          preferred_element_type=f32) + mlp_b2               # (BN, 2C)

        out_ref[...] = ml + mlp_out                                           # [mu | logsigma]

    return kernel


def fused_pipeline(x_stack, params, B, T):
    N, C = NUM_CONCEPT, CONCEPT_DIM
    BN = B * N

    def mod_spec(a):
        nd = a.ndim - 1
        return pl.BlockSpec((None,) + a.shape[1:],
                            lambda i, _nd=nd: (i,) + (0,) * _nd)

    masks = params['masks']
    args = [x_stack, params['mavg'], params['wA'], params['wB'], params['fc_w'],
            params['qkv_w'], params['proj_w'], params['vec'], masks]
    in_specs = [mod_spec(x_stack), mod_spec(params['mavg']), mod_spec(params['wA']),
                mod_spec(params['wB']), mod_spec(params['fc_w']),
                mod_spec(params['qkv_w']), mod_spec(params['proj_w']),
                mod_spec(params['vec']),
                pl.BlockSpec(masks.shape, lambda i: (0, 0))]

    return pl.pallas_call(
        make_fused_kernel(B, T),
        grid=(2,),
        in_specs=in_specs,
        out_specs=pl.BlockSpec((None, BN, 2 * C), lambda i: (i, 0, 0)),
        out_shape=jax.ShapeDtypeStruct((2, BN, 2 * C), jnp.float32),
        compiler_params=pltpu.CompilerParams(dimension_semantics=("parallel",)),
    )(*args)


# --------------------------------------------------------------------------
# forward (eval branch of Conceptualizing_Alignment2.forward)
# --------------------------------------------------------------------------
def _forward(params, ev_f, txt_f, actual_event_length, logit_scale, key):
    del actual_event_length                      # unused by the reference forward
    B, T, Din = ev_f.shape
    N, C = NUM_CONCEPT, CONCEPT_DIM

    ev_x = ev_f.reshape(B * T, Din).astype(jnp.float32)
    txt_x = txt_f.astype(jnp.float32)
    if B * T > B:
        txt_pad = jnp.concatenate(
            [txt_x, jnp.zeros((B * T - B, Din), jnp.float32)], axis=0)
    else:
        txt_pad = txt_x
    x_stack = jnp.stack([ev_x, txt_pad], axis=0)                 # (2, BT, Din)

    out = fused_pipeline(x_stack, params, B, T)                   # (2, B*N, 2C)
    out = out.reshape(2, N, B, 2 * C)                             # rows ordered (n, b)

    # Point_Feature_Sampling (eval branch keeps only sample S-1, concept N-1)
    k_ev, k_txt = jax.random.split(key)
    eps_ev = jax.random.normal(k_ev, (B, C), jnp.float32)
    eps_txt = jax.random.normal(k_txt, (B, C), jnp.float32)
    ev_last = out[0, N - 1, :, :C] + jnp.exp(out[0, N - 1, :, C:]) * eps_ev
    txt_last = out[1, N - 1, :, :C] + jnp.exp(out[1, N - 1, :, C:]) * eps_txt

    logits = logit_scale * (ev_last @ txt_last.T)
    logits_ori = logit_scale * (ev_f.mean(axis=1).astype(jnp.float32) @ txt_x.T)
    return logits, logits_ori


forward = jax.jit(_forward)


# --------------------------------------------------------------------------
# parameter construction + packing (done ONCE at init)
# --------------------------------------------------------------------------
def _make_modality_packed(key):
    N, C, D = NUM_CONCEPT, CONCEPT_DIM, INPUT_DIM
    Hd = MLP_RATIO * C
    f32, bf16 = jnp.float32, jnp.bfloat16
    keys = iter(jax.random.split(key, 24))

    def w(fi, fo):
        return jax.random.normal(next(keys), (fi, fo), f32) / math.sqrt(fi)

    def b(fo):
        return jax.random.uniform(next(keys), (fo,), f32, -0.05, 0.05)

    w1, b1 = w(D, D), b(D)
    w2, b2 = w(D, N * C), b(N * C)
    fc_w, fc_b = w(C, C), b(C)
    qkv_w = w(C, 3 * C)                          # qkv_bias=False
    mu_w, mu_b = w(C // 2, C), b(C)
    ls_w, ls_b = w(C // 2, C), b(C)
    mw1, mb1 = w(C, Hd), b(Hd)
    mw2, mb2 = w(Hd, C), b(C)
    lw1, lb1 = w(C, Hd), b(Hd)
    lw2, lb2 = w(Hd, C), b(C)
    ones, zeros = jnp.ones((C,), f32), jnp.zeros((C,), f32)

    # block-diagonal fusions (mu path | logsigma path)
    proj_w = (jnp.zeros((C, 2 * C), f32)
              .at[:C // 2, :C].set(mu_w).at[C // 2:, C:].set(ls_w))           # (64, 128)
    w1_blk = (jnp.zeros((2 * C, 2 * Hd), f32)
              .at[:C, :Hd].set(mw1).at[C:, Hd:].set(lw1))                      # (128, 512)
    w2_blk = (jnp.zeros((2 * Hd, 2 * C), f32)
              .at[:Hd, :C].set(mw2).at[Hd:, C:].set(lw2))                      # (512, 128)

    wA = jnp.concatenate([w1, w1_blk], axis=0).astype(bf16)                    # (640, 512)
    wB = jnp.concatenate([w2, w2_blk], axis=1).astype(bf16)                    # (512, 384)

    sgn = jnp.concatenate([jnp.ones((C,), f32), -jnp.ones((C,), f32)])

    def row(v):
        return jnp.zeros((D,), f32).at[:v.shape[0]].set(v)

    vec = jnp.stack([
        row(b1),                                   # 0
        row(jnp.concatenate([mb1, lb1])),          # 1
        row(b2),                                   # 2
        row(fc_b),                                 # 3
        row(ones), row(zeros),                     # 4,5  norm1 gamma/beta
        row(jnp.concatenate([mu_b, ls_b])),        # 6
        row(jnp.concatenate([ones, ones])),        # 7    norm2|norm3 gamma
        row(jnp.concatenate([zeros, zeros])),      # 8    norm2|norm3 beta
        row(jnp.concatenate([mb2, lb2])),          # 9
        row(sgn),                                  # 10
    ], axis=0)                                     # (11, 512) f32

    return {'wA': wA, 'wB': wB, 'fc_w': fc_w.astype(bf16),
            'qkv_w': qkv_w.astype(bf16), 'proj_w': proj_w.astype(bf16),
            'vec': vec}


def _make_masks(B):
    N, C, H = NUM_CONCEPT, CONCEPT_DIM, NUM_HEADS
    BN, hd = B * N, C // H
    HBN = H * BN
    W = max(C, HBN)
    f32 = jnp.float32

    m = jnp.arange(HBN)
    c = jnp.arange(C)
    head_sel = ((m[:, None] // BN) == (c[None, :] // hd)).astype(f32)          # (HBN, C)
    grp = ((m[:, None] // BN) == (m[None, :] // BN)).astype(f32)               # (HBN, HBN)
    r = jnp.arange(BN)
    smask = jnp.where((r[:, None] % B) == ((m[None, :] % BN) % B),
                      0.0, -1e30).astype(f32)                                  # (BN, HBN)

    def padw(a):
        return jnp.zeros((a.shape[0], W), f32).at[:, :a.shape[1]].set(a)

    return jnp.concatenate([padw(head_sel), padw(grp), padw(smask)], axis=0)


def _make_mavg(B, T):
    BT = B * T
    cols = jnp.arange(BT)
    rows = jnp.arange(B)
    mavg_ev = ((cols[None, :] // T) == rows[:, None]).astype(jnp.float32) / T
    mavg_txt = (cols[None, :] == rows[:, None]).astype(jnp.float32)
    return jnp.stack([mavg_ev, mavg_txt], axis=0)                               # (2, B, BT)


def init_params(key, B, T):
    k_ev, k_txt = jax.random.split(key)
    ev = _make_modality_packed(k_ev)
    txt = _make_modality_packed(k_txt)
    packed = {name: jnp.stack([ev[name], txt[name]], axis=0) for name in ev}
    packed['masks'] = _make_masks(B)
    packed['mavg'] = _make_mavg(B, T)
    return packed


# --------------------------------------------------------------------------
if __name__ == "__main__":
    root = jax.random.PRNGKey(0)
    k_p, k_ev, k_txt, k_s = jax.random.split(root, 4)

    B, T = 2, 3
    params = init_params(k_p, B, T)
    ev_f = jax.random.normal(k_ev, (B, T, INPUT_DIM), jnp.float32)
    txt_f = jax.random.normal(k_txt, (B, INPUT_DIM), jnp.float32)
    actual_event_length = jnp.full((B,), T, jnp.int32)
    logit_scale = jnp.float32(100.0)

    logits, logits_ori = forward(params, ev_f, txt_f, actual_event_length,
                                 logit_scale, k_s)
    jax.block_until_ready((logits, logits_ori))

    assert logits.shape == (B, B)
    assert logits_ori.shape == (B, B)
    assert bool(jnp.all(jnp.isfinite(logits)))
    assert bool(jnp.all(jnp.isfinite(logits_ori)))
    print("KERNEL_OK")
</pallas_src>

<mosaic_0001>
module attributes {stable_mosaic.version = 11 : i64} {
  func.func @kernel(%arg0: i32, %arg1: memref<1x6x512xf32, #tpu.memory_space<vmem>>, %arg2: memref<1x2x6xf32, #tpu.memory_space<vmem>>, %arg3: memref<1x640x512xbf16, #tpu.memory_space<vmem>>, %arg4: memref<1x512x384xbf16, #tpu.memory_space<vmem>>, %arg5: memref<1x64x64xbf16, #tpu.memory_space<vmem>>, %arg6: memref<1x64x192xbf16, #tpu.memory_space<vmem>>, %arg7: memref<1x64x128xbf16, #tpu.memory_space<vmem>>, %arg8: memref<1x11x512xf32, #tpu.memory_space<vmem>>, %arg9: memref<136x64xf32, #tpu.memory_space<vmem>>, %arg10: memref<1x8x128xf32, #tpu.memory_space<vmem>>) attributes {dimension_semantics = [#tpu.dimension_semantics<parallel>], iteration_bounds = array<i64: 2>, scalar_prefetch = 0 : i64, scratch_operands = 0 : i64, tpu.core_type = #tpu.core_type<tc>, window_params = [{transform_indices = @transform_0, window_bounds = array<i64: 1, 6, 512>}, {transform_indices = @transform_1, window_bounds = array<i64: 1, 2, 6>}, {transform_indices = @transform_2, window_bounds = array<i64: 1, 640, 512>}, {transform_indices = @transform_3, window_bounds = array<i64: 1, 512, 384>}, {transform_indices = @transform_4, window_bounds = array<i64: 1, 64, 64>}, {transform_indices = @transform_5, window_bounds = array<i64: 1, 64, 192>}, {transform_indices = @transform_6, window_bounds = array<i64: 1, 64, 128>}, {transform_indices = @transform_7, window_bounds = array<i64: 1, 11, 512>}, {pipeline_mode = #tpu.pipeline_mode<synchronous>, transform_indices = @transform_8, window_bounds = array<i64: 136, 64>}, {transform_indices = @transform_9, window_bounds = array<i64: 1, 8, 128>}]} {
    %c0 = arith.constant 0 : index
    %c0_0 = arith.constant 0 : index
    %c0_1 = arith.constant 0 : index
    %0 = vector.load %arg8[%c0, %c0_0, %c0_1] : memref<1x11x512xf32, #tpu.memory_space<vmem>>, vector<1x11x512xf32>
    %1 = vector.shape_cast %0 : vector<1x11x512xf32> to vector<11x512xf32>
    %2 = vector.extract_strided_slice %1 {offsets = [0, 0], sizes = [1, 512], strides = [1, 1]} : vector<11x512xf32> to vector<1x512xf32>
    %3 = vector.extract_strided_slice %1 {offsets = [1, 0], sizes = [1, 512], strides = [1, 1]} : vector<11x512xf32> to vector<1x512xf32>
    %4 = vector.extract_strided_slice %1 {offsets = [2, 0], sizes = [1, 256], strides = [1, 1]} : vector<11x512xf32> to vector<1x256xf32>
    %5 = vector.extract_strided_slice %1 {offsets = [3, 0], sizes = [1, 64], strides = [1, 1]} : vector<11x512xf32> to vector<1x64xf32>
    %6 = vector.extract_strided_slice %1 {offsets = [4, 0], sizes = [1, 64], strides = [1, 1]} : vector<11x512xf32> to vector<1x64xf32>
    %7 = vector.extract_strided_slice %1 {offsets = [5, 0], sizes = [1, 64], strides = [1, 1]} : vector<11x512xf32> to vector<1x64xf32>
    %8 = vector.extract_strided_slice %1 {offsets = [6, 0], sizes = [1, 128], strides = [1, 1]} : vector<11x512xf32> to vector<1x128xf32>
    %9 = vector.extract_strided_slice %1 {offsets = [7, 0], sizes = [1, 128], strides = [1, 1]} : vector<11x512xf32> to vector<1x128xf32>
    %10 = vector.extract_strided_slice %1 {offsets = [8, 0], sizes = [1, 128], strides = [1, 1]} : vector<11x512xf32> to vector<1x128xf32>
    %11 = vector.extract_strided_slice %1 {offsets = [9, 0], sizes = [1, 128], strides = [1, 1]} : vector<11x512xf32> to vector<1x128xf32>
    %12 = vector.extract_strided_slice %1 {offsets = [10, 0], sizes = [1, 128], strides = [1, 1]} : vector<11x512xf32> to vector<1x128xf32>
    %c0_2 = arith.constant 0 : index
    %c0_3 = arith.constant 0 : index
    %13 = vector.load %arg9[%c0_2, %c0_3] : memref<136x64xf32, #tpu.memory_space<vmem>>, vector<136x64xf32>
    %14 = vector.extract_strided_slice %13 {offsets = [0, 0], sizes = [64, 64], strides = [1, 1]} : vector<136x64xf32> to vector<64x64xf32>
    %15 = vector.extract_strided_slice %13 {offsets = [64, 0], sizes = [64, 64], strides = [1, 1]} : vector<136x64xf32> to vector<64x64xf32>
    %16 = vector.extract_strided_slice %13 {offsets = [128, 0], sizes = [8, 64], strides = [1, 1]} : vector<136x64xf32> to vector<8x64xf32>
    %c0_4 = arith.constant 0 : index
    %c0_5 = arith.constant 0 : index
    %c0_6 = arith.constant 0 : index
    %17 = vector.load %arg1[%c0_4, %c0_5, %c0_6] : memref<1x6x512xf32, #tpu.memory_space<vmem>>, vector<1x6x512xf32>
    %18 = vector.shape_cast %17 : vector<1x6x512xf32> to vector<6x512xf32>
    %19 = arith.truncf %18 : vector<6x512xf32> to vector<6x512xbf16>
    %c0_7 = arith.constant 0 : index
    %c0_8 = arith.constant 0 : index
    %c0_9 = arith.constant 0 : index
    %20 = vector.load %arg3[%c0_7, %c0_8, %c0_9] : memref<1x640x512xbf16, #tpu.memory_space<vmem>>, vector<1x512x512xbf16>
    %21 = vector.shape_cast %20 : vector<1x512x512xbf16> to vector<512x512xbf16>
    %cst = arith.constant dense<0.000000e+00> : vector<6x512xf32>
    %22 = tpu.matmul %19, %21, %cst {dimension_numbers = #tpu.dot_dimension_numbers<[1], [0], [0], [1], [0, 0, 1, 1], [], []>} : vector<6x512xbf16>, vector<512x512xbf16>, vector<6x512xf32> -> vector<6x512xf32>
    %23 = vector.broadcast %2 : vector<1x512xf32> to vector<6x512xf32>
    %24 = arith.addf %22, %23 : vector<6x512xf32>
    %cst_10 = arith.constant -1.702000e+00 : f32
    %25 = vector.broadcast %cst_10 : f32 to vector<6x512xf32>
    %26 = arith.mulf %25, %24 : vector<6x512xf32>
    %27 = math.exp %26 : vector<6x512xf32>
    %cst_11 = arith.constant 1.000000e+00 : f32
    %28 = vector.broadcast %cst_11 : f32 to vector<6x512xf32>
    %29 = arith.addf %28, %27 : vector<6x512xf32>
    %cst_12 = arith.constant 1.000000e+00 : f32
    %30 = vector.broadcast %cst_12 : f32 to vector<6x512xf32>
    %31 = arith.divf %30, %29 : vector<6x512xf32>
    %32 = arith.mulf %24, %31 : vector<6x512xf32>
    %c0_13 = arith.constant 0 : index
    %c0_14 = arith.constant 0 : index
    %c0_15 = arith.constant 0 : index
    %33 = vector.load %arg2[%c0_13, %c0_14, %c0_15] : memref<1x2x6xf32, #tpu.memory_space<vmem>>, vector<1x2x6xf32>
    %34 = vector.shape_cast %33 : vector<1x2x6xf32> to vector<2x6xf32>
    %cst_16 = arith.constant dense<0.000000e+00> : vector<2x512xf32>
    %35 = tpu.matmul %34, %32, %cst_16 {dimension_numbers = #tpu.dot_dimension_numbers<[1], [0], [0], [1], [0, 0, 1, 1], [], []>} : vector<2x6xf32>, vector<6x512xf32>, vector<2x512xf32> -> vector<2x512xf32>
    %36 = arith.truncf %35 : vector<2x512xf32> to vector<2x512xbf16>
    %c0_17 = arith.constant 0 : index
    %c0_18 = arith.constant 0 : index
    %c0_19 = arith.constant 0 : index
    %37 = vector.load %arg4[%c0_17, %c0_18, %c0_19] : memref<1x512x384xbf16, #tpu.memory_space<vmem>>, vector<1x512x256xbf16>
    %38 = vector.shape_cast %37 : vector<1x512x256xbf16> to vector<512x256xbf16>
    %cst_20 = arith.constant dense<0.000000e+00> : vector<2x256xf32>
    %39 = tpu.matmul %36, %38, %cst_20 {dimension_numbers = #tpu.dot_dimension_numbers<[1], [0], [0], [1], [0, 0, 1, 1], [], []>} : vector<2x512xbf16>, vector<512x256xbf16>, vector<2x256xf32> -> vector<2x256xf32>
    %40 = vector.broadcast %4 : vector<1x256xf32> to vector<2x256xf32>
    %41 = arith.addf %39, %40 : vector<2x256xf32>
    %42 = vector.extract_strided_slice %41 {offsets = [0, 0], sizes = [2, 64], strides = [1, 1]} : vector<2x256xf32> to vector<2x64xf32>
    %43 = vector.extract_strided_slice %41 {offsets = [0, 64], sizes = [2, 64], strides = [1, 1]} : vector<2x256xf32> to vector<2x64xf32>
    %44 = vector.extract_strided_slice %41 {offsets = [0, 128], sizes = [2, 64], strides = [1, 1]} : vector<2x256xf32> to vector<2x64xf32>
    %45 = vector.extract_strided_slice %41 {offsets = [0, 192], sizes = [2, 64], strides = [1, 1]} : vector<2x256xf32> to vector<2x64xf32>
    %46 = tpu.concatenate %42, %43, %44, %45 in 0 : vector<2x64xf32>, vector<2x64xf32>, vector<2x64xf32>, vector<2x64xf32> -> vector<8x64xf32>
    %47 = arith.truncf %46 : vector<8x64xf32> to vector<8x64xbf16>
    %c0_21 = arith.constant 0 : index
    %c0_22 = arith.constant 0 : index
    %c0_23 = arith.constant 0 : index
    %48 = vector.load %arg5[%c0_21, %c0_22, %c0_23] : memref<1x64x64xbf16, #tpu.memory_space<vmem>>, vector<1x64x64xbf16>
    %49 = vector.shape_cast %48 : vector<1x64x64xbf16> to vector<64x64xbf16>
    %cst_24 = arith.constant dense<0.000000e+00> : vector<8x64xf32>
    %50 = tpu.matmul %47, %49, %cst_24 {dimension_numbers = #tpu.dot_dimension_numbers<[1], [0], [0], [1], [0, 0, 1, 1], [], []>} : vector<8x64xbf16>, vector<64x64xbf16>, vector<8x64xf32> -> vector<8x64xf32>
    %51 = vector.broadcast %5 : vector<1x64xf32> to vector<8x64xf32>
    %52 = arith.addf %50, %51 : vector<8x64xf32>
    %cst_25 = arith.constant 5.000000e-01 : f32
    %53 = vector.broadcast %cst_25 : f32 to vector<8x64xf32>
    %54 = arith.mulf %53, %52 : vector<8x64xf32>
    %cst_26 = arith.constant 4.471500e-02 : f32
    %55 = vector.broadcast %cst_26 : f32 to vector<8x64xf32>
    %56 = arith.mulf %55, %52 : vector<8x64xf32>
    %57 = arith.mulf %56, %52 : vector<8x64xf32>
    %58 = arith.mulf %57, %52 : vector<8x64xf32>
    %59 = arith.addf %52, %58 : vector<8x64xf32>
    %cst_27 = arith.constant 0.797884583 : f32
    %60 = vector.broadcast %cst_27 : f32 to vector<8x64xf32>
    %61 = arith.mulf %60, %59 : vector<8x64xf32>
    %62 = math.tanh %61 : vector<8x64xf32>
    %cst_28 = arith.constant 1.000000e+00 : f32
    %63 = vector.broadcast %cst_28 : f32 to vector<8x64xf32>
    %64 = arith.addf %63, %62 : vector<8x64xf32>
    %65 = arith.mulf %54, %64 : vector<8x64xf32>
    %cst_29 = arith.constant dense<0.000000e+00> : vector<8xf32>
    %66 = vector.multi_reduction <add>, %65, %cst_29 [1] : vector<8x64xf32> to vector<8xf32>
    %67 = vector.shape_cast %66 : vector<8xf32> to vector<8x1xf32>
    %cst_30 = arith.constant 6.400000e+01 : f32
    %68 = vector.broadcast %cst_30 : f32 to vector<8x1xf32>
    %69 = arith.divf %67, %68 : vector<8x1xf32>
    %70 = vector.broadcast %69 : vector<8x1xf32> to vector<8x64xf32>
    %71 = arith.subf %65, %70 : vector<8x64xf32>
    %72 = arith.mulf %71, %71 : vector<8x64xf32>
    %cst_31 = arith.constant dense<0.000000e+00> : vector<8xf32>
    %73 = vector.multi_reduction <add>, %72, %cst_31 [1] : vector<8x64xf32> to vector<8xf32>
    %74 = vector.shape_cast %73 : vector<8xf32> to vector<8x1xf32>
    %cst_32 = arith.constant 6.400000e+01 : f32
    %75 = vector.broadcast %cst_32 : f32 to vector<8x1xf32>
    %76 = arith.divf %74, %75 : vector<8x1xf32>
    %77 = vector.broadcast %69 : vector<8x1xf32> to vector<8x64xf32>
    %78 = arith.subf %65, %77 : vector<8x64xf32>
    %cst_33 = arith.constant 9.99999974E-6 : f32
    %79 = vector.broadcast %cst_33 : f32 to vector<8x1xf32>
    %80 = arith.addf %76, %79 : vector<8x1xf32>
    %81 = math.rsqrt %80 : vector<8x1xf32>
    %82 = vector.broadcast %81 : vector<8x1xf32> to vector<8x64xf32>
    %83 = arith.mulf %78, %82 : vector<8x64xf32>
    %84 = vector.broadcast %6 : vector<1x64xf32> to vector<8x64xf32>
    %85 = arith.mulf %83, %84 : vector<8x64xf32>
    %86 = vector.broadcast %7 : vector<1x64xf32> to vector<8x64xf32>
    %87 = arith.addf %85, %86 : vector<8x64xf32>
    %88 = arith.truncf %87 : vector<8x64xf32> to vector<8x64xbf16>
    %c0_34 = arith.constant 0 : index
    %c0_35 = arith.constant 0 : index
    %c0_36 = arith.constant 0 : index
    %89 = vector.load %arg6[%c0_34, %c0_35, %c0_36] : memref<1x64x192xbf16, #tpu.memory_space<vmem>>, vector<1x64x192xbf16>
    %90 = vector.shape_cast %89 : vector<1x64x192xbf16> to vector<64x192xbf16>
    %cst_37 = arith.constant dense<0.000000e+00> : vector<8x192xf32>
    %91 = tpu.matmul %88, %90, %cst_37 {dimension_numbers = #tpu.dot_dimension_numbers<[1], [0], [0], [1], [0, 0, 1, 1], [], []>} : vector<8x64xbf16>, vector<64x192xbf16>, vector<8x192xf32> -> vector<8x192xf32>
    %92 = vector.extract_strided_slice %91 {offsets = [0, 0], sizes = [8, 64], strides = [1, 1]} : vector<8x192xf32> to vector<8x64xf32>
    %93 = vector.extract_strided_slice %91 {offsets = [0, 64], sizes = [8, 64], strides = [1, 1]} : vector<8x192xf32> to vector<8x64xf32>
    %94 = vector.extract_strided_slice %91 {offsets = [0, 128], sizes = [8, 64], strides = [1, 1]} : vector<8x192xf32> to vector<8x64xf32>
    %95 = tpu.concatenate %93, %93, %93, %93, %93, %93, %93, %93 in 0 : vector<8x64xf32>, vector<8x64xf32>, vector<8x64xf32>, vector<8x64xf32>, vector<8x64xf32>, vector<8x64xf32>, vector<8x64xf32>, vector<8x64xf32> -> vector<64x64xf32>
    %96 = arith.mulf %95, %14 : vector<64x64xf32>
    %97 = arith.truncf %96 : vector<64x64xf32> to vector<64x64xbf16>
    %98 = tpu.concatenate %94, %94, %94, %94, %94, %94, %94, %94 in 0 : vector<8x64xf32>, vector<8x64xf32>, vector<8x64xf32>, vector<8x64xf32>, vector<8x64xf32>, vector<8x64xf32>, vector<8x64xf32>, vector<8x64xf32> -> vector<64x64xf32>
    %99 = arith.mulf %98, %14 : vector<64x64xf32>
    %100 = arith.truncf %99 : vector<64x64xf32> to vector<64x64xbf16>
    %101 = arith.truncf %92 : vector<8x64xf32> to vector<8x64xbf16>
    %cst_38 = arith.constant dense<0.000000e+00> : vector<8x64xf32>
    %102 = tpu.matmul %101, %97, %cst_38 {dimension_numbers = #tpu.dot_dimension_numbers<[1], [1], [0], [0], [0, 0, 1, 0], [], []>} : vector<8x64xbf16>, vector<64x64xbf16>, vector<8x64xf32> -> vector<8x64xf32>
    %cst_39 = arith.constant 0.353553385 : f32
    %103 = vector.broadcast %cst_39 : f32 to vector<8x64xf32>
    %104 = arith.mulf %102, %103 : vector<8x64xf32>
    %105 = arith.addf %104, %16 : vector<8x64xf32>
    %cst_40 = arith.constant dense<0xFF800000> : vector<8xf32>
    %106 = vector.multi_reduction <maximumf>, %105, %cst_40 [1] : vector<8x64xf32> to vector<8xf32>
    %107 = vector.shape_cast %106 : vector<8xf32> to vector<8x1xf32>
    %108 = vector.broadcast %107 : vector<8x1xf32> to vector<8x64xf32>
    %109 = arith.subf %105, %108 : vector<8x64xf32>
    %110 = math.exp %109 : vector<8x64xf32>
    %cst_41 = arith.constant dense<0.000000e+00> : vector<8x64xf32>
    %111 = tpu.matmul %110, %15, %cst_41 {dimension_numbers = #tpu.dot_dimension_numbers<[1], [0], [0], [1], [0, 0, 1, 1], [], []>} : vector<8x64xf32>, vector<64x64xf32>, vector<8x64xf32> -> vector<8x64xf32>
    %112 = arith.divf %110, %111 : vector<8x64xf32>
    %113 = arith.truncf %112 : vector<8x64xf32> to vector<8x64xbf16>
    %cst_42 = arith.constant dense<0.000000e+00> : vector<8x64xf32>
    %114 = tpu.matmul %113, %100, %cst_42 {dimension_numbers = #tpu.dot_dimension_numbers<[1], [0], [0], [1], [0, 0, 1, 1], [], []>} : vector<8x64xbf16>, vector<64x64xbf16>, vector<8x64xf32> -> vector<8x64xf32>
    %115 = arith.truncf %114 : vector<8x64xf32> to vector<8x64xbf16>
    %c0_43 = arith.constant 0 : index
    %c0_44 = arith.constant 0 : index
    %c0_45 = arith.constant 0 : index
    %116 = vector.load %arg7[%c0_43, %c0_44, %c0_45] : memref<1x64x128xbf16, #tpu.memory_space<vmem>>, vector<1x64x128xbf16>
    %117 = vector.shape_cast %116 : vector<1x64x128xbf16> to vector<64x128xbf16>
    %cst_46 = arith.constant dense<0.000000e+00> : vector<8x128xf32>
    %118 = tpu.matmul %115, %117, %cst_46 {dimension_numbers = #tpu.dot_dimension_numbers<[1], [0], [0], [1], [0, 0, 1, 1], [], []>} : vector<8x64xbf16>, vector<64x128xbf16>, vector<8x128xf32> -> vector<8x128xf32>
    %119 = vector.broadcast %8 : vector<1x128xf32> to vector<8x128xf32>
    %120 = arith.addf %118, %119 : vector<8x128xf32>
    %cst_47 = arith.constant 0.000000e+00 : f32
    %121 = vector.broadcast %cst_47 : f32 to vector<8x64xf32>
    %122 = tpu.concatenate %46, %121 in 1 : vector<8x64xf32>, vector<8x64xf32> -> vector<8x128xf32>
    %123 = arith.addf %120, %122 : vector<8x128xf32>
    %cst_48 = arith.constant dense<0.000000e+00> : vector<8xf32>
    %124 = vector.multi_reduction <add>, %123, %cst_48 [1] : vector<8x128xf32> to vector<8xf32>
    %125 = vector.shape_cast %124 : vector<8xf32> to vector<8x1xf32>
    %cst_49 = arith.constant 1.280000e+02 : f32
    %126 = vector.broadcast %cst_49 : f32 to vector<8x1xf32>
    %127 = arith.divf %125, %126 : vector<8x1xf32>
    %128 = vector.broadcast %12 : vector<1x128xf32> to vector<8x128xf32>
    %129 = arith.mulf %123, %128 : vector<8x128xf32>
    %cst_50 = arith.constant dense<0.000000e+00> : vector<8xf32>
    %130 = vector.multi_reduction <add>, %129, %cst_50 [1] : vector<8x128xf32> to vector<8xf32>
    %131 = vector.shape_cast %130 : vector<8xf32> to vector<8x1xf32>
    %cst_51 = arith.constant 1.280000e+02 : f32
    %132 = vector.broadcast %cst_51 : f32 to vector<8x1xf32>
    %133 = arith.divf %131, %132 : vector<8x1xf32>
    %134 = vector.broadcast %12 : vector<1x128xf32> to vector<8x128xf32>
    %135 = vector.broadcast %133 : vector<8x1xf32> to vector<8x128xf32>
    %136 = arith.mulf %134, %135 : vector<8x128xf32>
    %137 = vector.broadcast %127 : vector<8x1xf32> to vector<8x128xf32>
    %138 = arith.addf %137, %136 : vector<8x128xf32>
    %139 = arith.subf %123, %138 : vector<8x128xf32>
    %140 = arith.mulf %139, %139 : vector<8x128xf32>
    %cst_52 = arith.constant dense<0.000000e+00> : vector<8xf32>
    %141 = vector.multi_reduction <add>, %140, %cst_52 [1] : vector<8x128xf32> to vector<8xf32>
    %142 = vector.shape_cast %141 : vector<8xf32> to vector<8x1xf32>
    %cst_53 = arith.constant 1.280000e+02 : f32
    %143 = vector.broadcast %cst_53 : f32 to vector<8x1xf32>
    %144 = arith.divf %142, %143 : vector<8x1xf32>
    %145 = vector.broadcast %12 : vector<1x128xf32> to vector<8x128xf32>
    %146 = arith.mulf %140, %145 : vector<8x128xf32>
    %cst_54 = arith.constant dense<0.000000e+00> : vector<8xf32>
    %147 = vector.multi_reduction <add>, %146, %cst_54 [1] : vector<8x128xf32> to vector<8xf32>
    %148 = vector.shape_cast %147 : vector<8xf32> to vector<8x1xf32>
    %cst_55 = arith.constant 1.280000e+02 : f32
    %149 = vector.broadcast %cst_55 : f32 to vector<8x1xf32>
    %150 = arith.divf %148, %149 : vector<8x1xf32>
    %151 = vector.broadcast %12 : vector<1x128xf32> to vector<8x128xf32>
    %152 = vector.broadcast %150 : vector<8x1xf32> to vector<8x128xf32>
    %153 = arith.mulf %151, %152 : vector<8x128xf32>
    %154 = vector.broadcast %144 : vector<8x1xf32> to vector<8x128xf32>
    %155 = arith.addf %154, %153 : vector<8x128xf32>
    %cst_56 = arith.constant 9.99999974E-6 : f32
    %156 = vector.broadcast %cst_56 : f32 to vector<8x128xf32>
    %157 = arith.addf %155, %156 : vector<8x128xf32>
    %158 = math.rsqrt %157 : vector<8x128xf32>
    %159 = arith.mulf %139, %158 : vector<8x128xf32>
    %160 = vector.broadcast %9 : vector<1x128xf32> to vector<8x128xf32>
    %161 = arith.mulf %159, %160 : vector<8x128xf32>
    %162 = vector.broadcast %10 : vector<1x128xf32> to vector<8x128xf32>
    %163 = arith.addf %161, %162 : vector<8x128xf32>
    %164 = arith.truncf %163 : vector<8x128xf32> to vector<8x128xbf16>
    %c0_57 = arith.constant 0 : index
    %c512 = arith.constant 512 : index
    %c0_58 = arith.constant 0 : index
    %165 = vector.load %arg3[%c0_57, %c512, %c0_58] : memref<1x640x512xbf16, #tpu.memory_space<vmem>>, vector<1x128x512xbf16>
    %166 = vector.shape_cast %165 : vector<1x128x512xbf16> to vector<128x512xbf16>
    %cst_59 = arith.constant dense<0.000000e+00> : vector<8x512xf32>
    %167 = tpu.matmul %164, %166, %cst_59 {dimension_numbers = #tpu.dot_dimension_numbers<[1], [0], [0], [1], [0, 0, 1, 1], [], []>} : vector<8x128xbf16>, vector<128x512xbf16>, vector<8x512xf32> -> vector<8x512xf32>
    %168 = vector.broadcast %3 : vector<1x512xf32> to vector<8x512xf32>
    %169 = arith.addf %167, %168 : vector<8x512xf32>
    %cst_60 = arith.constant 5.000000e-01 : f32
    %170 = vector.broadcast %cst_60 : f32 to vector<8x512xf32>
    %171 = arith.mulf %170, %169 : vector<8x512xf32>
    %cst_61 = arith.constant 4.471500e-02 : f32
    %172 = vector.broadcast %cst_61 : f32 to vector<8x512xf32>
    %173 = arith.mulf %172, %169 : vector<8x512xf32>
    %174 = arith.mulf %173, %169 : vector<8x512xf32>
    %175 = arith.mulf %174, %169 : vector<8x512xf32>
    %176 = arith.addf %169, %175 : vector<8x512xf32>
    %cst_62 = arith.constant 0.797884583 : f32
    %177 = vector.broadcast %cst_62 : f32 to vector<8x512xf32>
    %178 = arith.mulf %177, %176 : vector<8x512xf32>
    %179 = math.tanh %178 : vector<8x512xf32>
    %cst_63 = arith.constant 1.000000e+00 : f32
    %180 = vector.broadcast %cst_63 : f32 to vector<8x512xf32>
    %181 = arith.addf %180, %179 : vector<8x512xf32>
    %182 = arith.mulf %171, %181 : vector<8x512xf32>
    %183 = arith.truncf %182 : vector<8x512xf32> to vector<8x512xbf16>
    %c0_64 = arith.constant 0 : index
    %c0_65 = arith.constant 0 : index
    %c256 = arith.constant 256 : index
    %184 = vector.load %arg4[%c0_64, %c0_65, %c256] : memref<1x512x384xbf16, #tpu.memory_space<vmem>>, vector<1x512x128xbf16>
    %185 = vector.shape_cast %184 : vector<1x512x128xbf16> to vector<512x128xbf16>
    %cst_66 = arith.constant dense<0.000000e+00> : vector<8x128xf32>
    %186 = tpu.matmul %183, %185, %cst_66 {dimension_numbers = #tpu.dot_dimension_numbers<[1], [0], [0], [1], [0, 0, 1, 1], [], []>} : vector<8x512xbf16>, vector<512x128xbf16>, vector<8x128xf32> -> vector<8x128xf32>
    %187 = vector.broadcast %11 : vector<1x128xf32> to vector<8x128xf32>
    %188 = arith.addf %186, %187 : vector<8x128xf32>
    %189 = arith.addf %123, %188 : vector<8x128xf32>
    %c0_67 = arith.constant 0 : index
    %c0_68 = arith.constant 0 : index
    %c0_69 = arith.constant 0 : index
    %190 = vector.load %arg10[%c0_67, %c0_68, %c0_69] : memref<1x8x128xf32, #tpu.memory_space<vmem>>, vector<1x8x128xf32>
    %191 = vector.shape_cast %190 : vector<1x8x128xf32> to vector<8x128xf32>
    %192 = vector.shape_cast %189 : vector<8x128xf32> to vector<1x8x128xf32>
    tpu.vector_store %arg10[%c0_67, %c0_68, %c0_69], %192 {strides = array<i32>} : memref<1x8x128xf32, #tpu.memory_space<vmem>>, vector<1x8x128xf32>,
    return
  }
  func.func @transform_0(%arg0: i32) -> (i32, i32, i32) {
    %c0_i32 = arith.constant 0 : i32
    %c0_i32_0 = arith.constant 0 : i32
    %c0_i32_1 = arith.constant 0 : i32
    return %arg0, %c0_i32, %c0_i32_0 : i32, i32, i32
  }
  func.func @transform_1(%arg0: i32) -> (i32, i32, i32) {
    %c0_i32 = arith.constant 0 : i32
    %c0_i32_0 = arith.constant 0 : i32
    %c0_i32_1 = arith.constant 0 : i32
    return %arg0, %c0_i32, %c0_i32_0 : i32, i32, i32
  }
  func.func @transform_2(%arg0: i32) -> (i32, i32, i32) {
    %c0_i32 = arith.constant 0 : i32
    %c0_i32_0 = arith.constant 0 : i32
    %c0_i32_1 = arith.constant 0 : i32
    return %arg0, %c0_i32, %c0_i32_0 : i32, i32, i32
  }
  func.func @transform_3(%arg0: i32) -> (i32, i32, i32) {
    %c0_i32 = arith.constant 0 : i32
    %c0_i32_0 = arith.constant 0 : i32
    %c0_i32_1 = arith.constant 0 : i32
    return %arg0, %c0_i32, %c0_i32_0 : i32, i32, i32
  }
  func.func @transform_4(%arg0: i32) -> (i32, i32, i32) {
    %c0_i32 = arith.constant 0 : i32
    %c0_i32_0 = arith.constant 0 : i32
    %c0_i32_1 = arith.constant 0 : i32
    return %arg0, %c0_i32, %c0_i32_0 : i32, i32, i32
  }
  func.func @transform_5(%arg0: i32) -> (i32, i32, i32) {
    %c0_i32 = arith.constant 0 : i32
    %c0_i32_0 = arith.constant 0 : i32
    %c0_i32_1 = arith.constant 0 : i32
    return %arg0, %c0_i32, %c0_i32_0 : i32, i32, i32
  }
  func.func @transform_6(%arg0: i32) -> (i32, i32, i32) {
    %c0_i32 = arith.constant 0 : i32
    %c0_i32_0 = arith.constant 0 : i32
    %c0_i32_1 = arith.constant 0 : i32
    return %arg0, %c0_i32, %c0_i32_0 : i32, i32, i32
  }
  func.func @transform_7(%arg0: i32) -> (i32, i32, i32) {
    %c0_i32 = arith.constant 0 : i32
    %c0_i32_0 = arith.constant 0 : i32
    %c0_i32_1 = arith.constant 0 : i32
    return %arg0, %c0_i32, %c0_i32_0 : i32, i32, i32
  }
  func.func @transform_8(%arg0: i32) -> (i32, i32) {
    %c0_i32 = arith.constant 0 : i32
    %c0_i32_0 = arith.constant 0 : i32
    %c0_i32_1 = arith.constant 0 : i32
    return %c0_i32, %c0_i32_0 : i32, i32
  }
  func.func @transform_9(%arg0: i32) -> (i32, i32, i32) {
    %c0_i32 = arith.constant 0 : i32
    %c0_i32_0 = arith.constant 0 : i32
    %c0_i32_1 = arith.constant 0 : i32
    return %arg0, %c0_i32, %c0_i32_0 : i32, i32, i32
  }
}

</mosaic_0001>

<bundles_post_ra>
// kernel: _forward.3
= control target key start
LH: loop header
LB: loop body
LE: loop exit
PB: predicated region body
PF: predicated region fallthrough
CT: control target
= control target key end

     0   :  { %s5839_s0 = inlined_call_operand.vmem [shape: f32[2,6,512], index: 0, kind: input, shape index: {}]   ;;  %s5840_s1 = inlined_call_operand.hbm [shape: f32[2,2,6], index: 1, kind: input, shape index: {}]   ;;  %s5841_s2 = inlined_call_operand.hbm [shape: bf16[2,640,512], index: 2, kind: input, shape index: {}]   ;;  %s5842_s3 = inlined_call_operand.hbm [shape: bf16[2,512,384], index: 3, kind: input, shape index: {}]   ;;  %s5843_s4 = inlined_call_operand.hbm [shape: bf16[2,64,64], index: 4, kind: input, shape index: {}]   ;;  %s5844_s5 = inlined_call_operand.hbm [shape: bf16[2,64,192], index: 5, kind: input, shape index: {}]   ;;  %s5845_s6 = inlined_call_operand.hbm [shape: bf16[2,64,128], index: 6, kind: input, shape index: {}]   ;;  %s5846_s7 = inlined_call_operand.vmem [shape: f32[2,11,512], index: 7, kind: input, shape index: {}]   ;;  %s5847_s8 = inlined_call_operand.vmem [shape: f32[136,64], index: 8, kind: input, shape index: {}]   ;;  %s5848_s9 = inlined_call_operand.vmem [shape: f32[2,8,128], index: 9, kind: output, shape index: {}]  }
   0x1   :  { %5856 = sst [smem:[#allocation19_spill]] %s5841_s2 }
   0x2   :  { %5857 = sst [smem:[#allocation20_spill]] %s5843_s4 }
   0x3   :  { %5858 = sst [smem:[#allocation21_spill]] %s5848_s9 }
   0x4   :  { %14 = vsyncpa [#allocation3], 0 }
   0x5   :  { %16 = vsyncpa [#allocation3 + $0x1], 0 }
   0x6   :  { %17 = vsyncpa [#allocation5], 0 }
   0x7   :  { %19 = vsyncpa [#allocation5 + $0x1], 0 }
   0x8   :  { %20 = vsyncpa [#allocation8], 0 }
   0x9   :  { %22 = vsyncpa [#allocation8 + $0x1], 0 }
   0xa   :  { %23 = vsyncpa [#allocation11], 0 }
   0xb   :  { %25 = vsyncpa [#allocation11 + $0x1], 0  ;;  %s4986_s30 = smov 0   ;;  %s4988_s10 = smov 0  }
   0xc   :  { %s4990_s11 = smov 0   ;;  %s4992_s12 = smov 0  }
   0xd LB: > { %5859 = sst [smem:[#allocation16_spill]] %s4911_s11  ;;  %s5005_s13 = sadd.s32 4294967295, %s4915_s12   ;;  %s4915_s12 = sphi %s4992_s12, %s5874_s12   ;;  %s4911_s11 = sphi %s4990_s11, %s5876_s11   ;;  %s4907_s10 = sphi %s4988_s10, %s5878_s10   ;;  %s4903_s30 = sphi %s4986_s30, %s5877_s30  }
   0xe   : > { %s5008_s14 = sadd.s32 1, %s4915_s12   ;;  %s64_s16 = sadd.s32 1, %s4911_s11 }
   0xf   : > { %5860 = sst [smem:[#allocation17_spill]] %s5008_s14  ;;  %s61_s15 = ssub.s32 %s4915_s12, %s5008_s14 }
  0x10   : > { %p62_p0 = scmp.eq.s32.totalorder %s61_s15, 0  ;;  %p71_p1 = scmp.ne.s32.totalorder %s4911_s11, %s4907_s10 }
  0x11   : > { %p72_p2 = scmp.eq.s32.totalorder %s4915_s12, 0  ;;  %p77_p3 = scmp.ne.s32.totalorder %s4907_s10, %s4903_s30 }
  0x12   : > { %s5018_s17 = scalar_select %p62_p0, %s4911_s11, %s64_s16  }
  0x13   : > { %p73_p4 = por %p72_p2, %p71_p1  ;;  %p78_p5 = scmp.eq.s32.totalorder %s5005_s13, 0 }
  0x14   : > { %5861 = sst [smem:[#allocation18_spill]] %s5018_s17  ;;  %p4217_p6 = scmp.lt.s32.totalorder %s4915_s12, 2 }
  0x15   : > { %p5022_p7 = por %p78_p5, %p77_p3  ;;  %s5027_s19 = sand.u32 1, %s4911_s11  }
  0x16   : > { %p5029_p8 = pnand %p4217_p6, %p73_p4  ;;  %s5850_s21 = sand.u32 1, %s4915_s12  }
  0x17   : > { %s5862_s18 = scalar_select %p5022_p7, 1, 0 }
  0x18   : > { %s4180_s22 = smul.u32 1280, %s5027_s19  ;;  %s5864_s2 = sld [smem:[#allocation19_spill]] }
  0x19   : > { %s4181_s23 = smul.u32 20480, %s4915_s12  ;;  %s5045_s29 = scalar_lea.sflag [#allocation5], %s5850_s21 }
  0x1a   : > { %s337_s27 = scalar_lea.vmem [#allocation4], %s4180_s22  ;;  %p5051_p10 = pneg %p5029_p8 }
  0x1b   : > { %s344_s28 = sshll.u32 %s337_s27, 4  ;;  %s5041_s28 = int_to_ptr.vmem [resolvable:$true] %s344_s28 }
  0x1e   : > { %s5039_s26 = scalar_lea.hbm %s5864_s2, %s4181_s23  ;;  %s4694_s22 = scalar_lea.hbm %s5864_s2, 40960 }
  0x1f   : > { %s4689_s30 = scalar_lea.hbm %s5039_s26, 20480  ;;  %p4695_p13 = scmp.lt.u32.totalorder %s5039_s26, %s5864_s2 }
  0x20   : > { %p4690_p9 = scmp.ne.s32.totalorder %s5039_s26, %s4689_s30  ;;  %p4696_p0 = scmp.lt.u32.totalorder %s4694_s22, %s4689_s30 }
  0x21   : > { %p4698_p2 = scmp.lt.u32.totalorder %s4689_s30, %s5039_s26 }
  0x22   : > { %p4692_p11 = pnand %p5051_p10, %p4690_p9  ;;  %p4697_p1 = por %p4696_p0, %p4695_p13 }
  0x24   : > { %p4693_p12 = pneg %p4692_p11  ;;  %p4699_p3 = por %p4698_p2, %p4697_p1 }
  0x26   : > { %p4700_p4 = pnand %p4699_p3, %p4693_p12 }
  0x28   : > { %4703 = shalt.err (!%p4700_p4)
}
  0x29   : > { %s4704_s27 = scalar_lea.vmem %s5041_s28, 20480  ;;  %s4917_s16 = smov [#allocation4]  }
  0x2a   : > { %p4705_p5 = scmp.ne.s32.totalorder %s5041_s28, %s4704_s27  ;;  %s4709_s23 = sshll.u32 %s4917_s16, 4  ;;  %s4710_s23 = int_to_ptr.vmem [resolvable:$false] %s4709_s23 }
  0x2b   : > { %s4711_s24 = scalar_lea.vmem %s4710_s23, 40960  ;;  %p4712_p11 = scmp.lt.s32.totalorder %s5041_s28, %s4710_s23 }
  0x2c   : > { %p4707_p6 = pnand %p4705_p5, %p5051_p10  ;;  %p4713_p7 = scmp.lt.s32.totalorder %s4711_s24, %s4704_s27 }
  0x2e   : > { %p4708_p9 = pneg %p4707_p6  ;;  %p4714_p13 = por %p4713_p7, %p4712_p11 }
  0x30   : > { %p4715_p0 = pnand %p4714_p13, %p4708_p9 }
  0x32   : > { %4718 = shalt.err (!%p4715_p0)
}
  0x33   : > { %s4918_s30 = smov 256   ;;  %s4919_s22 = smov 16  }
  0x34   : > { %4204 = dma.hbm_to_vmem [thread:$0]  (!%p5029_p8), %s5039_s26, 20480, %s5041_s28, %s5045_s29, %s4918_s30, %s4918_s30, %s4919_s22  }
  0x35   : > { %p3709_p12 = scmp.ge.s32.totalorder %s4915_s12, 1  ;;  %p444_p7 = scmp.lt.s32.totalorder %s4915_s12, 3 }
  0x36   : > { %s5851_s25 = sshll.u32 %s5027_s19, 5  ;;  %s5852_s16 = sshll.u32 %s4915_s12, 9 }
  0x37   : > { %p5078_p1 = pnand %p3709_p12, %p444_p7  ;;  %s379_s23 = scalar_lea.vmem [#allocation7], %s5851_s25 }
  0x38   : > { %s386_s24 = sshll.u32 %s379_s23, 4  ;;  %s5867_s4 = sld [smem:[#allocation20_spill]]  ;;  %s5092_s24 = int_to_ptr.vmem [resolvable:$true] %s386_s24 }
  0x39   : > { %s5866_s27 = scalar_select %p5078_p1, 1, 0 }
  0x3a   : > { %s5868_s26 = sand.u32 1, %s4915_s12  }
  0x3b   : > { %s5096_s28 = scalar_lea.sflag [#allocation8], %s5868_s26 }
  0x3e   : > { %s5090_s17 = scalar_lea.hbm %s5867_s4, %s5852_s16  ;;  %s4724_s2 = scalar_lea.hbm %s5867_s4, 1024 }
  0x3f   : > { %s4719_s30 = scalar_lea.hbm %s5090_s17, 512  ;;  %p4725_p5 = scmp.lt.u32.totalorder %s5090_s17, %s5867_s4 }
  0x40   : > { %p4720_p2 = scmp.ne.s32.totalorder %s5090_s17, %s4719_s30  ;;  %p4726_p6 = scmp.lt.u32.totalorder %s4724_s2, %s4719_s30 }
  0x41   : > { %p4728_p11 = scmp.lt.u32.totalorder %s4719_s30, %s5090_s17 }
  0x42   : > { %p4722_p3 = pnand %p4720_p2, %p5051_p10  ;;  %p4727_p9 = por %p4726_p6, %p4725_p5 }
  0x44   : > { %p4723_p4 = pneg %p4722_p3  ;;  %p4729_p13 = por %p4728_p11, %p4727_p9 }
  0x46   : > { %p4730_p0 = pnand %p4729_p13, %p4723_p4 }
  0x48   : > { %4733 = shalt.err (!%p4730_p0)
}
  0x49   : > { %s4734_s26 = scalar_lea.vmem %s5092_s24, 512  ;;  %s4920_s22 = smov [#allocation7]  }
  0x4a   : > { %p4735_p12 = scmp.ne.s32.totalorder %s5092_s24, %s4734_s26  ;;  %s4739_s23 = sshll.u32 %s4920_s22, 4  ;;  %s4740_s23 = int_to_ptr.vmem [resolvable:$false] %s4739_s23 }
  0x4b   : > { %s4741_s25 = scalar_lea.vmem %s4740_s23, 1024  ;;  %p4742_p3 = scmp.lt.s32.totalorder %s5092_s24, %s4740_s23 }
  0x4c   : > { %p4737_p7 = pnand %p4735_p12, %p5051_p10  ;;  %p4743_p1 = scmp.lt.s32.totalorder %s4741_s25, %s4734_s26 }
  0x4e   : > { %p4738_p2 = pneg %p4737_p7  ;;  %p4744_p5 = por %p4743_p1, %p4742_p3 }
  0x50   : > { %p4745_p6 = pnand %p4744_p5, %p4738_p2 }
  0x52   : > { %4748 = shalt.err (!%p4745_p6)
}
  0x53   : > { %s4921_s30 = smov 64   ;;  %s4922_s2 = smov 4  }
  0x54   : > { %4210 = dma.hbm_to_vmem [thread:$0]  (!%p5029_p8), %s5090_s17, 512, %s5092_s24, %s5096_s28, %s4921_s30, %s4921_s30, %s4922_s2  }
  0x55   : > { %s3696_s21 = sshll.u32 %s5027_s19, 1  ;;  %s3697_s26 = sshll.u32 %s4915_s12, 5 }
  0x56   : > { %s5128_s25 = scalar_lea.hbm %s5840_s1, %s3697_s26  ;;  %s319_s16 = scalar_lea.vmem [#allocation2], %s3696_s21 }
  0x57   : > { %s326_s4 = sshll.u32 %s319_s16, 4  ;;  %s4182_s11 = smul.u32 768, %s5027_s19  ;;  %s5130_s4 = int_to_ptr.vmem [resolvable:$true] %s326_s4 }
  0x58   : > { %s316_s14 = scalar_lea.sflag [#allocation3], %s5027_s19  ;;  %s4749_s9 = scalar_lea.hbm %s5128_s25, 32 }
  0x59   : > { %p4750_p1 = scmp.ne.s32.totalorder %s5128_s25, %s4749_s9  ;;  %s4754_s26 = scalar_lea.hbm %s5840_s1, 64 }
  0x5a   : > { %p4755_p11 = scmp.lt.u32.totalorder %s5128_s25, %s5840_s1  ;;  %p4756_p13 = scmp.lt.u32.totalorder %s4754_s26, %s4749_s9 }
  0x5b   : > { %p4752_p4 = pnand %p4750_p1, %p5051_p10  ;;  %p4758_p12 = scmp.lt.u32.totalorder %s4749_s9, %s5128_s25 }
  0x5c   : > { %p4757_p0 = por %p4756_p13, %p4755_p11 }
  0x5d   : > { %p4753_p9 = pneg %p4752_p4 }
  0x5e   : > { %p4759_p7 = por %p4758_p12, %p4757_p0 }
  0x60   : > { %p4760_p2 = pnand %p4759_p7, %p4753_p9 }
  0x62   : > { %4763 = shalt.err (!%p4760_p2)
}
  0x63   : > { %s4764_s16 = scalar_lea.vmem %s5130_s4, 32  ;;  %s4923_s21 = smov [#allocation2]  }
  0x64   : > { %p4765_p3 = scmp.ne.s32.totalorder %s5130_s4, %s4764_s16  ;;  %s4769_s17 = sshll.u32 %s4923_s21, 4  ;;  %s4770_s17 = int_to_ptr.vmem [resolvable:$false] %s4769_s17 }
  0x65   : > { %s4771_s24 = scalar_lea.vmem %s4770_s17, 64  ;;  %p4772_p1 = scmp.lt.s32.totalorder %s5130_s4, %s4770_s17 }
  0x66   : > { %p4767_p5 = pnand %p4765_p3, %p5051_p10  ;;  %p4773_p4 = scmp.lt.s32.totalorder %s4771_s24, %s4764_s16 }
  0x68   : > { %p4768_p6 = pneg %p4767_p5  ;;  %p4774_p11 = por %p4773_p4, %p4772_p1 }
  0x6a   : > { %p4775_p13 = pnand %p4774_p11, %p4768_p6 }
  0x6c   : > { %4778 = shalt.err (!%p4775_p13)
}
  0x6d   : > { %4201 = dma.hbm_to_vmem [thread:$0]  (!%p5029_p8), %s5128_s25, 32, %s5130_s4, %s316_s14  }
  0x6e   : > { %s4183_s9 = smul.u32 12288, %s4915_s12  ;;  %s358_s26 = scalar_lea.vmem [#allocation6], %s4182_s11 }
  0x6f   : > { %s365_s22 = sshll.u32 %s358_s26, 4  ;;  %s3703_s17 = sshll.u32 %s5027_s19, 6  ;;  %s5163_s22 = int_to_ptr.vmem [resolvable:$true] %s365_s22 }
  0x70   : > { %s5161_s16 = scalar_lea.hbm %s5842_s3, %s4183_s9  ;;  %s4784_s14 = scalar_lea.hbm %s5842_s3, 24576 }
  0x71   : > { %s4779_s24 = scalar_lea.hbm %s5161_s16, 12288  ;;  %p4785_p7 = scmp.lt.u32.totalorder %s5161_s16, %s5842_s3 }
  0x72   : > { %p4780_p9 = scmp.ne.s32.totalorder %s5161_s16, %s4779_s24  ;;  %p4786_p2 = scmp.lt.u32.totalorder %s4784_s14, %s4779_s24 }
  0x73   : > { %p4788_p5 = scmp.lt.u32.totalorder %s4779_s24, %s5161_s16 }
  0x74   : > { %p4782_p0 = pnand %p4780_p9, %p5051_p10  ;;  %p4787_p3 = por %p4786_p2, %p4785_p7 }
  0x76   : > { %p4783_p12 = pneg %p4782_p0  ;;  %p4789_p6 = por %p4788_p5, %p4787_p3 }
  0x78   : > { %p4790_p1 = pnand %p4789_p6, %p4783_p12 }
  0x7a   : > { %4793 = shalt.err (!%p4790_p1)
}
  0x7b   : > { %s4794_s9 = scalar_lea.vmem %s5163_s22, 12288  ;;  %s4924_s23 = smov [#allocation6]  }
  0x7c   : > { %p4795_p4 = scmp.ne.s32.totalorder %s5163_s22, %s4794_s9  ;;  %s4799_s21 = sshll.u32 %s4924_s23, 4  ;;  %s4800_s21 = int_to_ptr.vmem [resolvable:$false] %s4799_s21 }
  0x7d   : > { %s4801_s4 = scalar_lea.vmem %s4800_s21, 24576  ;;  %p4802_p9 = scmp.lt.s32.totalorder %s5163_s22, %s4800_s21 }
  0x7e   : > { %p4797_p11 = pnand %p4795_p4, %p5051_p10  ;;  %p4803_p0 = scmp.lt.s32.totalorder %s4801_s4, %s4794_s9 }
  0x80   : > { %p4798_p13 = pneg %p4797_p11  ;;  %p4804_p7 = por %p4803_p0, %p4802_p9 }
  0x82   : > { %p4805_p2 = pnand %p4804_p7, %p4798_p13 }
  0x84   : > { %4808 = shalt.err (!%p4805_p2)
}
  0x85   : > { %s4925_s24 = smov 192   ;;  %s4926_s11 = smov 12  }
  0x86   : > { %4207 = dma.hbm_to_vmem [thread:$0]  (!%p5029_p8), %s5161_s16, 12288, %s5163_s22, %s5045_s29, %s4925_s24, %s4925_s24, %s4926_s11  }
  0x87   : > { %s4006_s14 = sshll.u32 %s4915_s12, 10  ;;  %s400_s9 = scalar_lea.vmem [#allocation9], %s3703_s17 }
  0x88   : > { %s5192_s23 = scalar_lea.hbm %s5844_s5, %s4006_s14  ;;  %s407_s21 = sshll.u32 %s400_s9, 4  ;;  %s5196_s21 = int_to_ptr.vmem [resolvable:$true] %s407_s21 }
  0x89   : > { %s4809_s4 = scalar_lea.hbm %s5192_s23, 1024  ;;  %s4814_s16 = scalar_lea.hbm %s5844_s5, 2048 }
  0x8a   : > { %p4810_p12 = scmp.ne.s32.totalorder %s5192_s23, %s4809_s4  ;;  %p4815_p6 = scmp.lt.u32.totalorder %s5192_s23, %s5844_s5 }
  0x8b   : > { %p4816_p1 = scmp.lt.u32.totalorder %s4814_s16, %s4809_s4  ;;  %p4818_p11 = scmp.lt.u32.totalorder %s4809_s4, %s5192_s23 }
  0x8c   : > { %p4812_p3 = pnand %p4810_p12, %p5051_p10 }
  0x8d   : > { %p4817_p4 = por %p4816_p1, %p4815_p6 }
  0x8e   : > { %p4813_p5 = pneg %p4812_p3 }
  0x8f   : > { %p4819_p13 = por %p4818_p11, %p4817_p4 }
  0x91   : > { %p4820_p9 = pnand %p4819_p13, %p4813_p5 }
  0x93   : > { %4823 = shalt.err (!%p4820_p9)
}
  0x94   : > { %s4824_s17 = scalar_lea.vmem %s5196_s21, 1024  ;;  %s4927_s14 = smov [#allocation9]  }
  0x95   : > { %p4825_p0 = scmp.ne.s32.totalorder %s5196_s21, %s4824_s17  ;;  %s4829_s25 = sshll.u32 %s4927_s14, 4  ;;  %s4830_s25 = int_to_ptr.vmem [resolvable:$false] %s4829_s25 }
  0x96   : > { %s4831_s26 = scalar_lea.vmem %s4830_s25, 2048  ;;  %p4832_p12 = scmp.lt.s32.totalorder %s5196_s21, %s4830_s25 }
  0x97   : > { %p4827_p7 = pnand %p4825_p0, %p5051_p10  ;;  %p4833_p3 = scmp.lt.s32.totalorder %s4831_s26, %s4824_s17 }
  0x99   : > { %p4828_p2 = pneg %p4827_p7  ;;  %p4834_p6 = por %p4833_p3, %p4832_p12 }
  0x9b   : > { %p4835_p1 = pnand %p4834_p6, %p4828_p2 }
  0x9d   : > { %4838 = shalt.err (!%p4835_p1)
}
  0x9e   : > { %s4928_s9 = smov 128   ;;  %s4929_s4 = smov 8  }
  0x9f   : > { %4213 = dma.hbm_to_vmem [thread:$0]  (!%p5029_p8), %s5192_s23, 1024, %s5196_s21, %s5096_s28, %s4928_s9, %s4928_s9, %s4929_s4  }
  0xa0   : > { %s5869_s29 = sshll.u32 %s4915_s12, 9  ;;  %s5870_s11 = sshll.u32 %s5027_s19, 5 }
  0xa1   : > { %s5225_s24 = scalar_lea.hbm %s5845_s6, %s5869_s29  ;;  %s421_s17 = scalar_lea.vmem [#allocation10], %s5870_s11 }
  0xa2   : > { %s428_s14 = sshll.u32 %s421_s17, 4  ;;  %s418_s25 = scalar_lea.sflag [#allocation11], %s5027_s19  ;;  %s5229_s14 = int_to_ptr.vmem [resolvable:$true] %s428_s14 }
  0xa3   : > { %s4839_s26 = scalar_lea.hbm %s5225_s24, 512  ;;  %s4844_s23 = scalar_lea.hbm %s5845_s6, 1024 }
  0xa4   : > { %p4840_p5 = scmp.ne.s32.totalorder %s5225_s24, %s4839_s26  ;;  %p4845_p13 = scmp.lt.u32.totalorder %s5225_s24, %s5845_s6 }
  0xa5   : > { %p4846_p9 = scmp.lt.u32.totalorder %s4844_s23, %s4839_s26  ;;  %p4848_p7 = scmp.lt.u32.totalorder %s4839_s26, %s5225_s24 }
  0xa6   : > { %p4842_p4 = pnand %p4840_p5, %p5051_p10 }
  0xa7   : > { %p4847_p0 = por %p4846_p9, %p4845_p13 }
  0xa8   : > { %p4843_p11 = pneg %p4842_p4 }
  0xa9   : > { %p4849_p2 = por %p4848_p7, %p4847_p0 }
  0xab   : > { %p4850_p12 = pnand %p4849_p2, %p4843_p11 }
  0xad   : > { %4853 = shalt.err (!%p4850_p12)
}
  0xae   : > { %s4854_s4 = scalar_lea.vmem %s5229_s14, 512  ;;  %s4930_s29 = smov [#allocation10]  }
  0xaf   : > { %p4855_p3 = scmp.ne.s32.totalorder %s5229_s14, %s4854_s4  ;;  %s4859_s22 = sshll.u32 %s4930_s29, 4  ;;  %s4860_s22 = int_to_ptr.vmem [resolvable:$false] %s4859_s22 }
  0xb0   : > { %s4861_s16 = scalar_lea.vmem %s4860_s22, 1024  ;;  %p4862_p5 = scmp.lt.s32.totalorder %s5229_s14, %s4860_s22 }
  0xb1   : > { %p4857_p6 = pnand %p4855_p3, %p5051_p10  ;;  %p4863_p4 = scmp.lt.s32.totalorder %s4861_s16, %s4854_s4 }
  0xb3   : > { %p4858_p1 = pneg %p4857_p6  ;;  %p4864_p13 = por %p4863_p4, %p4862_p5 }
  0xb5   : > { %p4865_p9 = pnand %p4864_p13, %p4858_p1 }
  0xb7   : > { %4868 = shalt.err (!%p4865_p9)
}
  0xb8   : > { %4216 = dma.hbm_to_vmem [thread:$0]  (!%p5029_p8), %s5225_s24, 512, %s5229_s14, %s418_s25, %s4921_s30, %s4921_s30, %s4922_s2  }
  0xb9   : > { %p5871_p10 = scmp.ne.s32.totalorder %s5866_s27, 0 }
  0xba   : > { %s450_s15 = sand.u32 (!%p5871_p10), 1, %s4907_s10   ;;  %p5872_p11 = scmp.ne.s32.totalorder (!%p5871_p10), %s5862_s18, 0 }
  0xbb   : > { %448 = sbr.rel (%p5871_p10) target bundleno = 3941 (0xf65), region = 56  ;;  %s3710_s11 = sshll.u32 (!%p5871_p10), %s450_s15, 1 }
  0xbc   : > { %s451_s17 = scalar_lea.sflag (!%p5871_p10), [#allocation3], %s450_s15  ;;  %s5261_s26 = scalar_lea.vmem (!%p5871_p10), [#allocation2], %s3710_s11 }
  0xc2   : > { %4886 = dma.done.wait (%p5872_p11), %s451_s17, 32  }
  0xc3   : > { %4888 = vsyncadd (%p5872_p11), %s451_s17, 4294967264  ;;  %s459_s19 = sand.u32 1, %s5005_s13   ;;  %s4184_s20 = smul.u32 1280, %s450_s15 }
  0xc4   : > { %s460_s30 = scalar_lea.sflag [#allocation5], %s459_s19 }
  0xc5   : > { %s5268_s2 = scalar_lea.vmem [#allocation4], %s4184_s20 }
  0xc6   : > { %4890 = dma.done.wait (%p5872_p11), %s460_s30, 32768  }
  0xc7   : > { %4892 = vsyncadd (%p5872_p11), %s460_s30, 4294934528  ;;  %s4185_s27 = smul.u32 768, %s450_s15  ;;  %s3711_s24 = sshll.u32 %s450_s15, 5 }
  0xc8   : > { %s478_s25 = scalar_lea.sflag [#allocation8], %s459_s19  ;;  %s5276_s12 = scalar_lea.vmem [#allocation7], %s3711_s24 }
  0xc9   : > { %s5274_s14 = scalar_lea.vmem [#allocation6], %s4185_s27 }
  0xca   : > { %4894 = dma.done.wait (%p5872_p11), %s478_s25, 1536  }
  0xcb   : > { %4896 = vsyncadd (%p5872_p11), %s478_s25, 4294965760  ;;  %s3712_s28 = sshll.u32 %s450_s15, 6  ;;  %s496_s21 = scalar_lea.sflag [#allocation11], %s450_s15 }
  0xcc   : > { %s5282_s23 = scalar_lea.vmem [#allocation9], %s3712_s28  ;;  %s5284_s9 = scalar_lea.vmem [#allocation10], %s3711_s24 }
  0xcd   : > { %4898 = dma.done.wait (%p5872_p11), %s496_s21, 512  }
  0xce   : > { %4900 = vsyncadd (%p5872_p11), %s496_s21, 4294966784  ;;  %v4263_v0 = vld [vmem:[%s5268_s2 + $0x4] ss:$16 sps:$4 sm:$0xff]   ;;  %v4265_v1 = vld [vmem:[%s5268_s2 + $0xc] ss:$16 sps:$4 sm:$0xff]   ;;  %p568_p8 = scmp.lt.s32.totalorder %s5005_s13, 1 }
  0xcf   : > { %1397 = vmatprep.subr.bf16.mxu0 %v4263_v0  ;;  %v4267_v2 = vld [vmem:[%s5268_s2] ss:$16 sps:$4 sm:$0xff]   ;;  %v4268_v3 = vld [vmem:[%s5268_s2 + $0x8] ss:$16 sps:$4 sm:$0xff]   ;;  %1479 = vmatprep.subr.bf16.mxu1 %v4265_v1  ;;  %v4269_v4 = vld [vmem:[%s5268_s2 + $0x24] ss:$16 sps:$4 sm:$0xff]  }
  0xd0   : > { %1398 = vmatpush1.bf16.msra.mxu0 %v4267_v2  ;;  %1480 = vmatpush1.bf16.msra.mxu1 %v4268_v3  ;;  %v4271_v5 = vld [vmem:[%s5268_s2 + $0x2c] ss:$16 sps:$4 sm:$0xff]   ;;  %v4273_v6 = vld [vmem:[%s5268_s2 + $0x20] ss:$16 sps:$4 sm:$0xff]   ;;  %v4274_v7 = vld [vmem:[%s5268_s2 + $0x28] ss:$16 sps:$4 sm:$0xff]  }
  0xd1   : > { %1399 = vmatprep.subr.bf16.mxu0 %v4269_v4  ;;  %1481 = vmatprep.subr.bf16.mxu1 %v4271_v5  ;;  %v4275_v8 = vld [vmem:[%s5268_s2 + $0x44] ss:$16 sps:$4 sm:$0xff]   ;;  %v4277_v9 = vld [vmem:[%s5268_s2 + $0x4c] ss:$16 sps:$4 sm:$0xff]   ;;  %v4279_v10 = vld [vmem:[%s5268_s2 + $0x40] ss:$16 sps:$4 sm:$0xff]  }
  0xd2   : > { %v4280_v11 = vld [vmem:[%s5268_s2 + $0x48] ss:$16 sps:$4 sm:$0xff]   ;;  %v4281_v12 = vld [vmem:[%s5268_s2 + $0x64] ss:$16 sps:$4 sm:$0xff]   ;;  %v4283_v13 = vld [vmem:[%s5268_s2 + $0x6c] ss:$16 sps:$4 sm:$0xff]  }
  0xd3   : > { %v4285_v14 = vld [vmem:[%s5268_s2 + $0x60] ss:$16 sps:$4 sm:$0xff]   ;;  %v4286_v15 = vld [vmem:[%s5268_s2 + $0x68] ss:$16 sps:$4 sm:$0xff]   ;;  %v4287_v16 = vld [vmem:[%s5268_s2 + $0x84] ss:$16 sps:$4 sm:$0xff]  }
  0xd4   : > { %1400 = vmatpush1.bf16.msra.mxu0 %v4273_v6  ;;  %1482 = vmatpush1.bf16.msra.mxu1 %v4274_v7  ;;  %v4289_v17 = vld [vmem:[%s5268_s2 + $0x8c] ss:$16 sps:$4 sm:$0xff]   ;;  %v4291_v18 = vld [vmem:[%s5268_s2 + $0x80] ss:$16 sps:$4 sm:$0xff]   ;;  %v4292_v19 = vld [vmem:[%s5268_s2 + $0x88] ss:$16 sps:$4 sm:$0xff]  }
  0xd5   : > { %1401 = vmatprep.subr.bf16.mxu0 %v4275_v8  ;;  %1483 = vmatprep.subr.bf16.mxu1 %v4277_v9  ;;  %v4293_v20 = vld [vmem:[%s5268_s2 + $0xa4] ss:$16 sps:$4 sm:$0xff]   ;;  %v4295_v21 = vld [vmem:[%s5268_s2 + $0xac] ss:$16 sps:$4 sm:$0xff]   ;;  %v4297_v22 = vld [vmem:[%s5268_s2 + $0xa0] ss:$16 sps:$4 sm:$0xff]  }
  0xd6   : > { %v4298_v23 = vld [vmem:[%s5268_s2 + $0xa8] ss:$16 sps:$4 sm:$0xff]   ;;  %v4299_v24 = vld [vmem:[%s5268_s2 + $0xc4] ss:$16 sps:$4 sm:$0xff]   ;;  %v4301_v25 = vld [vmem:[%s5268_s2 + $0xcc] ss:$16 sps:$4 sm:$0xff]  }
  0xd7   : > { %v4303_v26 = vld [vmem:[%s5268_s2 + $0xc0] ss:$16 sps:$4 sm:$0xff]   ;;  %v4304_v27 = vld [vmem:[%s5268_s2 + $0xc8] ss:$16 sps:$4 sm:$0xff]   ;;  %v4305_v28 = vld [vmem:[%s5268_s2 + $0xe4] ss:$16 sps:$4 sm:$0xff]  }
  0xd8   : > { %1402 = vmatpush1.bf16.msra.mxu0 %v4279_v10  ;;  %1484 = vmatpush1.bf16.msra.mxu1 %v4280_v11  ;;  %v4307_v29 = vld [vmem:[%s5268_s2 + $0xec] ss:$16 sps:$4 sm:$0xff]   ;;  %v4309_v30 = vld [vmem:[%s5268_s2 + $0xe0] ss:$16 sps:$4 sm:$0xff]   ;;  %v4310_v31 = vld [vmem:[%s5268_s2 + $0xe8] ss:$16 sps:$4 sm:$0xff]  }
  0xd9   : > { %1403 = vmatprep.subr.bf16.mxu0 %v4281_v12  ;;  %1485 = vmatprep.subr.bf16.mxu1 %v4283_v13  ;;  %v4311_v32 = vld [vmem:[%s5268_s2 + $0x104] ss:$16 sps:$4 sm:$0xff]   ;;  %v4313_v33 = vld [vmem:[%s5268_s2 + $0x10c] ss:$16 sps:$4 sm:$0xff]   ;;  %v4315_v34 = vld [vmem:[%s5268_s2 + $0x100] ss:$16 sps:$4 sm:$0xff]  }
  0xda   : > { %v4316_v35 = vld [vmem:[%s5268_s2 + $0x108] ss:$16 sps:$4 sm:$0xff]   ;;  %v4317_v36 = vld [vmem:[%s5268_s2 + $0x124] ss:$16 sps:$4 sm:$0xff]   ;;  %s5880_s13 = smov (!%p568_p8, %s5005_s13), 1  ;;  %vm1594_vm0 = vcmask 1045504  }
  0xdb   : > { %v4319_v37 = vld [vmem:[%s5268_s2 + $0x12c] ss:$16 sps:$4 sm:$0xff]   ;;  %v4321_v38 = vld [vmem:[%s5268_s2 + $0x120] ss:$16 sps:$4 sm:$0xff]   ;;  %v4322_v39 = vld [vmem:[%s5268_s2 + $0x128] ss:$16 sps:$4 sm:$0xff]  }
  0xdc   : > { %1404 = vmatpush1.bf16.msra.mxu0 %v4285_v14  ;;  %1486 = vmatpush1.bf16.msra.mxu1 %v4286_v15  ;;  %v4323_v40 = vld [vmem:[%s5268_s2 + $0x144] ss:$16 sps:$4 sm:$0xff]   ;;  %s4008_s18 = sshll.u32 %s5880_s13, 5  ;;  %v4325_v41 = vld [vmem:[%s5268_s2 + $0x14c] ss:$16 sps:$4 sm:$0xff]   ;;  %s4009_s16 = sshll.u32 %s5880_s13, 6 }
  0xdd   : > { %1405 = vmatprep.subr.bf16.mxu0 %v4287_v16  ;;  %1487 = vmatprep.subr.bf16.mxu1 %v4289_v17  ;;  %v4327_v42 = vld [vmem:[%s5268_s2 + $0x140] ss:$16 sps:$4 sm:$0xff]   ;;  %v4328_v43 = vld [vmem:[%s5268_s2 + $0x148] ss:$16 sps:$4 sm:$0xff]   ;;  %s5342_s22 = scalar_lea.vmem %s5839_s0, %s4008_s18  ;;  %v4329_v44 = vld [vmem:[%s5268_s2 + $0x164] ss:$16 sps:$4 sm:$0xff]   ;;  %s5469_s17 = scalar_lea.vmem %s5846_s7, %s4009_s16 }
  0xde   : > { %v4331_v45 = vld [vmem:[%s5268_s2 + $0x16c] ss:$16 sps:$4 sm:$0xff]   ;;  %v606_v46 = vld [vmem:[%s5342_s22 + $0x8] sm:$0x3f]  ;;  %v4333_v47 = vld [vmem:[%s5268_s2 + $0x160] ss:$16 sps:$4 sm:$0xff]  }
  0xdf   : > { %v610_v48 = vpack.c.bf16 %v606_v46, %v606_v46  ;;  %v4334_v49 = vld [vmem:[%s5268_s2 + $0x168] ss:$16 sps:$4 sm:$0xff]   ;;  %v4335_v50 = vld [vmem:[%s5268_s2 + $0x184] ss:$16 sps:$4 sm:$0xff]   ;;  %v4337_v51 = vld [vmem:[%s5268_s2 + $0x18c] ss:$16 sps:$4 sm:$0xff]  }
  0xe0   : > { %1406 = vmatpush1.bf16.msra.mxu0 %v4291_v18  ;;  %1488 = vmatpush1.bf16.msra.mxu1 %v4292_v19  ;;  %v4339_v52 = vld [vmem:[%s5268_s2 + $0x180] ss:$16 sps:$4 sm:$0xff]   ;;  %v4340_v53 = vld [vmem:[%s5268_s2 + $0x188] ss:$16 sps:$4 sm:$0xff]   ;;  %v4341_v54 = vld [vmem:[%s5268_s2 + $0x1a4] ss:$16 sps:$4 sm:$0xff]  }
  0xe1   : > { %1407 = vmatprep.subr.bf16.mxu0 %v4293_v20  ;;  %1489 = vmatprep.subr.bf16.mxu1 %v4295_v21  ;;  %v4343_v55 = vld [vmem:[%s5268_s2 + $0x1ac] ss:$16 sps:$4 sm:$0xff]   ;;  %v4345_v56 = vld [vmem:[%s5268_s2 + $0x1a0] ss:$16 sps:$4 sm:$0xff]   ;;  %v4346_v57 = vld [vmem:[%s5268_s2 + $0x1a8] ss:$16 sps:$4 sm:$0xff]  }
  0xe2   : > { %1429 = vmatprep.mubr.bf16.mxu0 %v610_v48  ;;  %1511 = vmatprep.mubr.bf16.mxu1 %v610_v48  ;;  %v4347_v58 = vld [vmem:[%s5268_s2 + $0x1c4] ss:$16 sps:$4 sm:$0xff]   ;;  %v4349_v59 = vld [vmem:[%s5268_s2 + $0x1cc] ss:$16 sps:$4 sm:$0xff]   ;;  %v4351_v60 = vld [vmem:[%s5268_s2 + $0x1c0] ss:$16 sps:$4 sm:$0xff]  }
  0xe3   : > { %v4352_v61 = vld [vmem:[%s5268_s2 + $0x1c8] ss:$16 sps:$4 sm:$0xff]   ;;  %v4353_v62 = vld [vmem:[%s5268_s2 + $0x1e4] ss:$16 sps:$4 sm:$0xff]   ;;  %v4355_v63 = vld [vmem:[%s5268_s2 + $0x1ec] ss:$16 sps:$4 sm:$0xff]  }
  0xe4   : > { %1408 = vmatpush1.bf16.msra.mxu0 %v4297_v22  ;;  %1490 = vmatpush1.bf16.msra.mxu1 %v4298_v23  ;;  %v4357_v0 = vld [vmem:[%s5268_s2 + $0x1e0] ss:$16 sps:$4 sm:$0xff]   ;;  %v4358_v1 = vld [vmem:[%s5268_s2 + $0x1e8] ss:$16 sps:$4 sm:$0xff]   ;;  %v4361_v3 = vld [vmem:[%s5268_s2 + $0x204] ss:$16 sps:$4 sm:$0xff]  }
  0xe5   : > { %1409 = vmatprep.subr.bf16.mxu0 %v4299_v24  ;;  %1491 = vmatprep.subr.bf16.mxu1 %v4301_v25  ;;  %v605_v2 = vld [vmem:[%s5342_s22] sm:$0x3f]  ;;  %v4362_v7 = vld [vmem:[%s5268_s2 + $0x208] ss:$16 sps:$4 sm:$0xff]   ;;  %v4367_v8 = vld [vmem:[%s5268_s2 + $0x224] ss:$16 sps:$4 sm:$0xff]  }
  0xe6   : > { %v4364_v4 = vld [vmem:[%s5268_s2 + $0x20c] ss:$16 sps:$4 sm:$0xff]   ;;  %v609_v5 = vpack.c.bf16 %v605_v2, %v605_v2  ;;  %v4359_v6 = vld [vmem:[%s5268_s2 + $0x200] ss:$16 sps:$4 sm:$0xff]   ;;  %v4368_v11 = vld [vmem:[%s5268_s2 + $0x228] ss:$16 sps:$4 sm:$0xff]  }
  0xe7   : > { %v4370_v9 = vld [vmem:[%s5268_s2 + $0x22c] ss:$16 sps:$4 sm:$0xff]   ;;  %v4365_v10 = vld [vmem:[%s5268_s2 + $0x220] ss:$16 sps:$4 sm:$0xff]   ;;  %v4373_v12 = vld [vmem:[%s5268_s2 + $0x244] ss:$16 sps:$4 sm:$0xff]  }
  0xe8   : > { %1410 = vmatpush1.bf16.msra.mxu0 %v4303_v26  ;;  %1492 = vmatpush1.bf16.msra.mxu1 %v4304_v27  ;;  %v4376_v13 = vld [vmem:[%s5268_s2 + $0x24c] ss:$16 sps:$4 sm:$0xff]   ;;  %v4371_v14 = vld [vmem:[%s5268_s2 + $0x240] ss:$16 sps:$4 sm:$0xff]   ;;  %v4374_v15 = vld [vmem:[%s5268_s2 + $0x248] ss:$16 sps:$4 sm:$0xff]  }
  0xe9   : > { %1411 = vmatprep.subr.bf16.mxu0 %v4305_v28  ;;  %1493 = vmatprep.subr.bf16.mxu1 %v4307_v29  ;;  %v4379_v16 = vld [vmem:[%s5268_s2 + $0x264] ss:$16 sps:$4 sm:$0xff]   ;;  %v4382_v17 = vld [vmem:[%s5268_s2 + $0x26c] ss:$16 sps:$4 sm:$0xff]   ;;  %v4377_v18 = vld [vmem:[%s5268_s2 + $0x260] ss:$16 sps:$4 sm:$0xff]  }
  0xea   : > { %v4380_v19 = vld [vmem:[%s5268_s2 + $0x268] ss:$16 sps:$4 sm:$0xff]   ;;  %v4385_v20 = vld [vmem:[%s5268_s2 + $0x284] ss:$16 sps:$4 sm:$0xff]   ;;  %v4388_v21 = vld [vmem:[%s5268_s2 + $0x28c] ss:$16 sps:$4 sm:$0xff]  }
  0xeb   : > { %v4383_v22 = vld [vmem:[%s5268_s2 + $0x280] ss:$16 sps:$4 sm:$0xff]   ;;  %v4386_v23 = vld [vmem:[%s5268_s2 + $0x288] ss:$16 sps:$4 sm:$0xff]   ;;  %v4391_v24 = vld [vmem:[%s5268_s2 + $0x2a4] ss:$16 sps:$4 sm:$0xff]  }
  0xec   : > { %1412 = vmatpush1.bf16.msra.mxu0 %v4309_v30  ;;  %1494 = vmatpush1.bf16.msra.mxu1 %v4310_v31  ;;  %v4394_v25 = vld [vmem:[%s5268_s2 + $0x2ac] ss:$16 sps:$4 sm:$0xff]   ;;  %v4389_v26 = vld [vmem:[%s5268_s2 + $0x2a0] ss:$16 sps:$4 sm:$0xff]   ;;  %v4392_v27 = vld [vmem:[%s5268_s2 + $0x2a8] ss:$16 sps:$4 sm:$0xff]  }
  0xed   : > { %1413 = vmatprep.subr.bf16.mxu0 %v4311_v32  ;;  %1495 = vmatprep.subr.bf16.mxu1 %v4313_v33  ;;  %v4397_v28 = vld [vmem:[%s5268_s2 + $0x2c4] ss:$16 sps:$4 sm:$0xff]   ;;  %v4400_v29 = vld [vmem:[%s5268_s2 + $0x2cc] ss:$16 sps:$4 sm:$0xff]   ;;  %v4395_v30 = vld [vmem:[%s5268_s2 + $0x2c0] ss:$16 sps:$4 sm:$0xff]  }
  0xee   : > { %v4398_v31 = vld [vmem:[%s5268_s2 + $0x2c8] ss:$16 sps:$4 sm:$0xff]   ;;  %v4403_v33 = vld [vmem:[%s5268_s2 + $0x2e4] ss:$16 sps:$4 sm:$0xff]   ;;  %v4419_v48 = vld [vmem:[%s5268_s2 + $0x340] ss:$16 sps:$4 sm:$0xff]  }
  0xef   : > { %v608_v32 = vld [vmem:[%s5342_s22 + $0x18] sm:$0x3f]  ;;  %vm1590_vm1 = vcmask 48128   ;;  %vm4932_vm2 = vmmov 0   ;;  %vm2239_vm3 = vcmask 1041408   ;;  %vm2241_vm4 = vcmask 1043456  }
  0xf0   : > { %1414 = vmatpush1.bf16.msra.mxu0 %v4315_v34  ;;  %1496 = vmatpush1.bf16.msra.mxu1 %v4316_v35  ;;  %v4406_v34 = vld [vmem:[%s5268_s2 + $0x2ec] ss:$16 sps:$4 sm:$0xff]   ;;  %v612_v35 = vpack.c.bf16 %v608_v32, %v608_v32  ;;  %v4421_v46 = vld [vmem:[%s5268_s2 + $0x344] ss:$16 sps:$4 sm:$0xff]   ;;  %vm2281_vm5 = vcmask 523264  }
  0xf1   : > { %1415 = vmatprep.subr.bf16.mxu0 %v4317_v36  ;;  %1497 = vmatprep.subr.bf16.mxu1 %v4319_v37  ;;  %v4401_v36 = vld [vmem:[%s5268_s2 + $0x2e0] ss:$16 sps:$4 sm:$0xff]   ;;  %v4404_v37 = vld [vmem:[%s5268_s2 + $0x2e8] ss:$16 sps:$4 sm:$0xff]   ;;  %v4451_v2 = vld [vmem:[%s5268_s2 + $0x3e4] ss:$16 sps:$4 sm:$0xff]  }
  0xf2   : > { %v4488_v32 = vld [vmem:[%s5274_s14 + $0x108] ss:$12 sps:$4 sm:$0xff]  }
  0xf4   : > { %1416 = vmatpush1.bf16.msra.mxu0 %v4321_v38  ;;  %1498 = vmatpush1.bf16.msra.mxu1 %v4322_v39  ;;  %v4409_v38 = vld [vmem:[%s5268_s2 + $0x304] ss:$16 sps:$4 sm:$0xff]   ;;  %v4412_v39 = vld [vmem:[%s5268_s2 + $0x30c] ss:$16 sps:$4 sm:$0xff]  }
  0xf5   : > { %1417 = vmatprep.subr.bf16.mxu0 %v4323_v40  ;;  %1499 = vmatprep.subr.bf16.mxu1 %v4325_v41  ;;  %v4407_v40 = vld [vmem:[%s5268_s2 + $0x300] ss:$16 sps:$4 sm:$0xff]   ;;  %v4410_v41 = vld [vmem:[%s5268_s2 + $0x308] ss:$16 sps:$4 sm:$0xff]  }
  0xf8   : > { %1418 = vmatpush1.bf16.msra.mxu0 %v4327_v42  ;;  %1500 = vmatpush1.bf16.msra.mxu1 %v4328_v43  ;;  %v4415_v42 = vld [vmem:[%s5268_s2 + $0x324] ss:$16 sps:$4 sm:$0xff]   ;;  %v4418_v43 = vld [vmem:[%s5268_s2 + $0x32c] ss:$16 sps:$4 sm:$0xff]  }
  0xf9   : > { %1419 = vmatprep.subr.bf16.mxu0 %v4329_v44  ;;  %1501 = vmatprep.subr.bf16.mxu1 %v4331_v45  ;;  %v4413_v44 = vld [vmem:[%s5268_s2 + $0x320] ss:$16 sps:$4 sm:$0xff]   ;;  %v4416_v45 = vld [vmem:[%s5268_s2 + $0x328] ss:$16 sps:$4 sm:$0xff]  }
  0xfc   : > { %1420 = vmatpush1.bf16.msra.mxu0 %v4333_v47  ;;  %1502 = vmatpush1.bf16.msra.mxu1 %v4334_v49  ;;  %v4424_v47 = vld [vmem:[%s5268_s2 + $0x34c] ss:$16 sps:$4 sm:$0xff]   ;;  %v4422_v49 = vld [vmem:[%s5268_s2 + $0x348] ss:$16 sps:$4 sm:$0xff]  }
  0xfd   : > { %1421 = vmatprep.subr.bf16.mxu0 %v4335_v50  ;;  %1503 = vmatprep.subr.bf16.mxu1 %v4337_v51  ;;  %v4427_v50 = vld [vmem:[%s5268_s2 + $0x364] ss:$16 sps:$4 sm:$0xff]   ;;  %v4430_v51 = vld [vmem:[%s5268_s2 + $0x36c] ss:$16 sps:$4 sm:$0xff]  }
 0x100   : > { %1422 = vmatpush1.bf16.msra.mxu0 %v4339_v52  ;;  %1504 = vmatpush1.bf16.msra.mxu1 %v4340_v53  ;;  %v4425_v52 = vld [vmem:[%s5268_s2 + $0x360] ss:$16 sps:$4 sm:$0xff]   ;;  %v4428_v53 = vld [vmem:[%s5268_s2 + $0x368] ss:$16 sps:$4 sm:$0xff]  }
 0x101   : > { %1423 = vmatprep.subr.bf16.mxu0 %v4341_v54  ;;  %1505 = vmatprep.subr.bf16.mxu1 %v4343_v55  ;;  %v4433_v54 = vld [vmem:[%s5268_s2 + $0x384] ss:$16 sps:$4 sm:$0xff]   ;;  %v4436_v55 = vld [vmem:[%s5268_s2 + $0x38c] ss:$16 sps:$4 sm:$0xff]  }
 0x104   : > { %1424 = vmatpush1.bf16.msra.mxu0 %v4345_v56  ;;  %1506 = vmatpush1.bf16.msra.mxu1 %v4346_v57  ;;  %v4431_v56 = vld [vmem:[%s5268_s2 + $0x380] ss:$16 sps:$4 sm:$0xff]   ;;  %v4434_v57 = vld [vmem:[%s5268_s2 + $0x388] ss:$16 sps:$4 sm:$0xff]  }
 0x105   : > { %1425 = vmatprep.subr.bf16.mxu0 %v4347_v58  ;;  %1507 = vmatprep.subr.bf16.mxu1 %v4349_v59  ;;  %v4439_v58 = vld [vmem:[%s5268_s2 + $0x3a4] ss:$16 sps:$4 sm:$0xff]   ;;  %v4442_v59 = vld [vmem:[%s5268_s2 + $0x3ac] ss:$16 sps:$4 sm:$0xff]  }
 0x108   : > { %1426 = vmatpush1.bf16.msra.mxu0 %v4351_v60  ;;  %1508 = vmatpush1.bf16.msra.mxu1 %v4352_v61  ;;  %v4437_v60 = vld [vmem:[%s5268_s2 + $0x3a0] ss:$16 sps:$4 sm:$0xff]   ;;  %v4440_v61 = vld [vmem:[%s5268_s2 + $0x3a8] ss:$16 sps:$4 sm:$0xff]  }
 0x109   : > { %1427 = vmatprep.subr.bf16.mxu0 %v4353_v62  ;;  %1509 = vmatprep.subr.bf16.mxu1 %v4355_v63  ;;  %v4445_v62 = vld [vmem:[%s5268_s2 + $0x3c4] ss:$16 sps:$4 sm:$0xff]   ;;  %v4448_v63 = vld [vmem:[%s5268_s2 + $0x3cc] ss:$16 sps:$4 sm:$0xff]  }
 0x10c   : > { %1428 = vmatpush1.bf16.msra.mxu0 %v4357_v0  ;;  %1510 = vmatpush1.bf16.msra.mxu1 %v4358_v1  ;;  %v4443_v0 = vld [vmem:[%s5268_s2 + $0x3c0] ss:$16 sps:$4 sm:$0xff]   ;;  %v4446_v1 = vld [vmem:[%s5268_s2 + $0x3c8] ss:$16 sps:$4 sm:$0xff]  }
 0x10d   : > { %1438 = vmatprep.subr.bf16.mxu0 %v4361_v3  ;;  %1520 = vmatprep.subr.bf16.mxu1 %v4364_v4  ;;  %v4454_v3 = vld [vmem:[%s5268_s2 + $0x3ec] ss:$16 sps:$4 sm:$0xff]   ;;  %v4449_v4 = vld [vmem:[%s5268_s2 + $0x3e0] ss:$16 sps:$4 sm:$0xff]  }
 0x10f   : > { %1430 = vmatmul.mubr.bf16.vlgmr.msra.gmra.mrb[0].mxu0 %v609_v5  ;;  %1512 = vmatmul.mubr.bf16.vlgmr.msra.gmra.mrb[0].mxu1 %v609_v5  ;;  %v4452_v5 = vld [vmem:[%s5268_s2 + $0x3e8] ss:$16 sps:$4 sm:$0xff]  }
 0x110   : > { %1439 = vmatpush1.bf16.msra.mxu0 %v4359_v6  ;;  %1521 = vmatpush1.bf16.msra.mxu1 %v4362_v7  ;;  %v607_v6 = vld [vmem:[%s5342_s22 + $0x10] sm:$0x3f] }
 0x111   : > { %1440 = vmatprep.subr.bf16.mxu0 %v4367_v8  ;;  %1522 = vmatprep.subr.bf16.mxu1 %v4370_v9  ;;  %v611_v7 = vpack.c.bf16 %v607_v6, %v607_v6  ;;  %v4931_v8 = vmov 0.0   ;;  %v4455_v9 = vld [vmem:[%s5274_s14] ss:$12 sps:$4 sm:$0xff]  }
 0x112   : > { %1470 = vmatprep.mubr.bf16.mxu0 %v612_v35  ;;  %1552 = vmatprep.mubr.bf16.mxu1 %v612_v35  ;;  %v4496_v35 = vld [vmem:[%s5274_s14 + $0x13c] ss:$12 sps:$4 sm:$0xff]  }
 0x114   : > { %1441 = vmatpush1.bf16.msra.mxu0 %v4365_v10  ;;  %1523 = vmatpush1.bf16.msra.mxu1 %v4368_v11  ;;  %v4457_v10 = vld [vmem:[%s5274_s14 + $0x4] ss:$12 sps:$4 sm:$0xff]   ;;  %v4460_v11 = vld [vmem:[%s5274_s14 + $0x1c] ss:$12 sps:$4 sm:$0xff]  }
 0x115   : > { %1442 = vmatprep.subr.bf16.mxu0 %v4373_v12  ;;  %1524 = vmatprep.subr.bf16.mxu1 %v4376_v13  ;;  %v4458_v12 = vld [vmem:[%s5274_s14 + $0x18] ss:$12 sps:$4 sm:$0xff]   ;;  %v4463_v13 = vld [vmem:[%s5274_s14 + $0x34] ss:$12 sps:$4 sm:$0xff]  }
 0x118   : > { %1443 = vmatpush1.bf16.msra.mxu0 %v4371_v14  ;;  %1525 = vmatpush1.bf16.msra.mxu1 %v4374_v15  ;;  %v4461_v14 = vld [vmem:[%s5274_s14 + $0x30] ss:$12 sps:$4 sm:$0xff]   ;;  %v4466_v15 = vld [vmem:[%s5274_s14 + $0x4c] ss:$12 sps:$4 sm:$0xff]  }
 0x119   : > { %1444 = vmatprep.subr.bf16.mxu0 %v4379_v16  ;;  %1526 = vmatprep.subr.bf16.mxu1 %v4382_v17  ;;  %v4464_v16 = vld [vmem:[%s5274_s14 + $0x48] ss:$12 sps:$4 sm:$0xff]   ;;  %v4469_v17 = vld [vmem:[%s5274_s14 + $0x64] ss:$12 sps:$4 sm:$0xff]  }
 0x11c   : > { %1445 = vmatpush1.bf16.msra.mxu0 %v4377_v18  ;;  %1527 = vmatpush1.bf16.msra.mxu1 %v4380_v19  ;;  %v4467_v18 = vld [vmem:[%s5274_s14 + $0x60] ss:$12 sps:$4 sm:$0xff]   ;;  %v4472_v19 = vld [vmem:[%s5274_s14 + $0x7c] ss:$12 sps:$4 sm:$0xff]  }
 0x11d   : > { %1446 = vmatprep.subr.bf16.mxu0 %v4385_v20  ;;  %1528 = vmatprep.subr.bf16.mxu1 %v4388_v21  ;;  %v4470_v20 = vld [vmem:[%s5274_s14 + $0x78] ss:$12 sps:$4 sm:$0xff]   ;;  %v4475_v21 = vld [vmem:[%s5274_s14 + $0x94] ss:$12 sps:$4 sm:$0xff]  }
 0x120   : > { %1447 = vmatpush1.bf16.msra.mxu0 %v4383_v22  ;;  %1529 = vmatpush1.bf16.msra.mxu1 %v4386_v23  ;;  %v4473_v22 = vld [vmem:[%s5274_s14 + $0x90] ss:$12 sps:$4 sm:$0xff]   ;;  %v4478_v23 = vld [vmem:[%s5274_s14 + $0xac] ss:$12 sps:$4 sm:$0xff]  }
 0x121   : > { %1448 = vmatprep.subr.bf16.mxu0 %v4391_v24  ;;  %1530 = vmatprep.subr.bf16.mxu1 %v4394_v25  ;;  %v4476_v24 = vld [vmem:[%s5274_s14 + $0xa8] ss:$12 sps:$4 sm:$0xff]   ;;  %v4481_v25 = vld [vmem:[%s5274_s14 + $0xc4] ss:$12 sps:$4 sm:$0xff]  }
 0x124   : > { %1449 = vmatpush1.bf16.msra.mxu0 %v4389_v26  ;;  %1531 = vmatpush1.bf16.msra.mxu1 %v4392_v27  ;;  %v4479_v26 = vld [vmem:[%s5274_s14 + $0xc0] ss:$12 sps:$4 sm:$0xff]   ;;  %v4484_v27 = vld [vmem:[%s5274_s14 + $0xdc] ss:$12 sps:$4 sm:$0xff]  }
 0x125   : > { %1450 = vmatprep.subr.bf16.mxu0 %v4397_v28  ;;  %1532 = vmatprep.subr.bf16.mxu1 %v4400_v29  ;;  %v4482_v28 = vld [vmem:[%s5274_s14 + $0xd8] ss:$12 sps:$4 sm:$0xff]   ;;  %v4487_v29 = vld [vmem:[%s5274_s14 + $0xf4] ss:$12 sps:$4 sm:$0xff]  }
 0x128   : > { %1451 = vmatpush1.bf16.msra.mxu0 %v4395_v30  ;;  %1533 = vmatpush1.bf16.msra.mxu1 %v4398_v31  ;;  %v4485_v30 = vld [vmem:[%s5274_s14 + $0xf0] ss:$12 sps:$4 sm:$0xff]   ;;  %v4490_v31 = vld [vmem:[%s5274_s14 + $0x10c] ss:$12 sps:$4 sm:$0xff]  }
 0x129   : > { %1452 = vmatprep.subr.bf16.mxu0 %v4403_v33  ;;  %1534 = vmatprep.subr.bf16.mxu1 %v4406_v34  ;;  %v4493_v33 = vld [vmem:[%s5274_s14 + $0x124] ss:$12 sps:$4 sm:$0xff]   ;;  %v4491_v34 = vld [vmem:[%s5274_s14 + $0x120] ss:$12 sps:$4 sm:$0xff]  }
 0x12c   : > { %1453 = vmatpush1.bf16.msra.mxu0 %v4401_v36  ;;  %1535 = vmatpush1.bf16.msra.mxu1 %v4404_v37  ;;  %v4494_v36 = vld [vmem:[%s5274_s14 + $0x138] ss:$12 sps:$4 sm:$0xff]   ;;  %v4499_v37 = vld [vmem:[%s5274_s14 + $0x154] ss:$12 sps:$4 sm:$0xff]  }
 0x12d   : > { %1454 = vmatprep.subr.bf16.mxu0 %v4409_v38  ;;  %1536 = vmatprep.subr.bf16.mxu1 %v4412_v39  ;;  %v4497_v38 = vld [vmem:[%s5274_s14 + $0x150] ss:$12 sps:$4 sm:$0xff]   ;;  %v741_v39 = vlaneseq }
 0x130   : > { %1455 = vmatpush1.bf16.msra.mxu0 %v4407_v40  ;;  %1537 = vmatpush1.bf16.msra.mxu1 %v4410_v41  ;;  %v5464_v40 = vshrl.u32 %v741_v39, 7  ;;  %v4514_v39 = vld [vmem:[%s5274_s14 + $0x1cc] ss:$12 sps:$4 sm:$0xff]  }
 0x131   : > { %1456 = vmatprep.subr.bf16.mxu0 %v4415_v42  ;;  %1538 = vmatprep.subr.bf16.mxu1 %v4418_v43  ;;  %v5475_v42 = vld [vmem:[%s5469_s17] sm:$0xff]  ;;  %v585_v43 = vld [vmem:[%s5469_s17 + $0x10] sm:$0xff] }
 0x132   : > { %v5472_v41 = vsub.s32 0, %v5464_v40 }
 0x134   : > { %1457 = vmatpush1.bf16.msra.mxu0 %v4413_v44  ;;  %1539 = vmatpush1.bf16.msra.mxu1 %v4416_v45  ;;  %v5479_v44 = vld [vmem:[%s5469_s17 + $0x8] sm:$0xff]  ;;  %v586_v45 = vld [vmem:[%s5469_s17 + $0x18] sm:$0xff] }
 0x135   : > { %1458 = vmatprep.subr.bf16.mxu0 %v4421_v46  ;;  %1540 = vmatprep.subr.bf16.mxu1 %v4424_v47  ;;  %v744_v46 = vrot.slane %v5475_v42, %v5472_v41  ;;  %v752_v47 = vrot.slane %v585_v43, %v5472_v41  ;;  %v4512_v43 = vld [vmem:[%s5274_s14 + $0x1c8] ss:$12 sps:$4 sm:$0xff]  }
 0x138   : > { %1459 = vmatpush1.bf16.msra.mxu0 %v4419_v48  ;;  %1541 = vmatpush1.bf16.msra.mxu1 %v4422_v49  ;;  %v748_v48 = vrot.slane %v5479_v44, %v5472_v41  ;;  %v756_v49 = vrot.slane %v586_v45, %v5472_v41  ;;  %v4517_v45 = vld [vmem:[%s5274_s14 + $0x1e4] ss:$12 sps:$4 sm:$0xff]  }
 0x139   : > { %1460 = vmatprep.subr.bf16.mxu0 %v4427_v50  ;;  %1542 = vmatprep.subr.bf16.mxu1 %v4430_v51 }
 0x13c   : > { %1461 = vmatpush1.bf16.msra.mxu0 %v4425_v52  ;;  %1543 = vmatpush1.bf16.msra.mxu1 %v4428_v53 }
 0x13d   : > { %1462 = vmatprep.subr.bf16.mxu0 %v4433_v54  ;;  %1544 = vmatprep.subr.bf16.mxu1 %v4436_v55 }
 0x140   : > { %1463 = vmatpush1.bf16.msra.mxu0 %v4431_v56  ;;  %1545 = vmatpush1.bf16.msra.mxu1 %v4434_v57 }
 0x141   : > { %1464 = vmatprep.subr.bf16.mxu0 %v4439_v58  ;;  %1546 = vmatprep.subr.bf16.mxu1 %v4442_v59 }
 0x144   : > { %1465 = vmatpush1.bf16.msra.mxu0 %v4437_v60  ;;  %1547 = vmatpush1.bf16.msra.mxu1 %v4440_v61 }
 0x145   : > { %1466 = vmatprep.subr.bf16.mxu0 %v4445_v62  ;;  %1548 = vmatprep.subr.bf16.mxu1 %v4448_v63 }
 0x148   : > { %1467 = vmatpush1.bf16.msra.mxu0 %v4443_v0  ;;  %1549 = vmatpush1.bf16.msra.mxu1 %v4446_v1 }
 0x149   : > { %1468 = vmatprep.subr.bf16.mxu0 %v4451_v2  ;;  %1550 = vmatprep.subr.bf16.mxu1 %v4454_v3 }
 0x14c   : > { %1469 = vmatpush1.bf16.msra.mxu0 %v4449_v4  ;;  %1551 = vmatpush1.bf16.msra.mxu1 %v4452_v5 }
 0x14d   : > { %2145 = vmatprep.subr.bf16.mxu0 %v4457_v10 }
 0x14f   : > { %1471 = vmatmul.mubr.bf16.vlgmr.msra.gmra.mrb[0].mxu0 %v611_v7  ;;  %1553 = vmatmul.mubr.bf16.vlgmr.msra.gmra.mrb[0].mxu1 %v611_v7 }
 0x150   : > { %1671 = vmatprep.mubr.f32.mxu1 %v4931_v8  ;;  %2146 = vmatpush1.bf16.msra.mxu0 %v4455_v9 }
 0x151   : > { %2147 = vmatprep.subr.bf16.mxu0 %v4460_v11 }
 0x154   : > { %2148 = vmatpush1.bf16.msra.mxu0 %v4458_v12 }
 0x155   : > { %2149 = vmatprep.subr.bf16.mxu0 %v4463_v13 }
 0x158   : > { %2150 = vmatpush1.bf16.msra.mxu0 %v4461_v14 }
 0x159   : > { %2151 = vmatprep.subr.bf16.mxu0 %v4466_v15 }
 0x15c   : > { %2152 = vmatpush1.bf16.msra.mxu0 %v4464_v16 }
 0x15d   : > { %2153 = vmatprep.subr.bf16.mxu0 %v4469_v17 }
 0x160   : > { %2154 = vmatpush1.bf16.msra.mxu0 %v4467_v18 }
 0x161   : > { %2155 = vmatprep.subr.bf16.mxu0 %v4472_v19 }
 0x164   : > { %2156 = vmatpush1.bf16.msra.mxu0 %v4470_v20 }
 0x165   : > { %2157 = vmatprep.subr.bf16.mxu0 %v4475_v21  ;;  %v1589_v21 = vld [vmem:[%s5261_s26] sm:$0x3]  ;;  %s4933_s26 = smov 64  }
 0x168   : > { %2158 = vmatpush1.bf16.msra.mxu0 %v4473_v22 }
 0x169   : > { %2159 = vmatprep.subr.bf16.mxu0 %v4478_v23 }
 0x16c   : > { %2160 = vmatpush1.bf16.msra.mxu0 %v4476_v24  ;;  %v4502_v24 = vld [vmem:[%s5274_s14 + $0x16c] ss:$12 sps:$4 sm:$0xff]  }
 0x16d   : > { %2161 = vmatprep.subr.bf16.mxu0 %v4481_v25  ;;  %v4500_v25 = vld [vmem:[%s5274_s14 + $0x168] ss:$12 sps:$4 sm:$0xff]  }
 0x170   : > { %2162 = vmatpush1.bf16.msra.mxu0 %v4479_v26  ;;  %v4505_v26 = vld [vmem:[%s5274_s14 + $0x184] ss:$12 sps:$4 sm:$0xff]  }
 0x171   : > { %2163 = vmatprep.subr.bf16.mxu0 %v4484_v27 }
 0x174   : > { %2164 = vmatpush1.bf16.msra.mxu0 %v4482_v28 }
 0x175   : > { %2165 = vmatprep.subr.bf16.mxu0 %v4487_v29 }
 0x178   : > { %2166 = vmatpush1.bf16.msra.mxu0 %v4485_v30  ;;  %v4503_v30 = vld [vmem:[%s5274_s14 + $0x180] ss:$12 sps:$4 sm:$0xff]  }
 0x179   : > { %2167 = vmatprep.subr.bf16.mxu0 %v4490_v31 }
 0x17c   : > { %2168 = vmatpush1.bf16.msra.mxu0 %v4488_v32  ;;  %v4508_v32 = vld [vmem:[%s5274_s14 + $0x19c] ss:$12 sps:$4 sm:$0xff]  }
 0x17d   : > { %2169 = vmatprep.subr.bf16.mxu0 %v4493_v33 }
 0x180   : > { %2170 = vmatpush1.bf16.msra.mxu0 %v4491_v34 }
 0x181   : > { %2171 = vmatprep.subr.bf16.mxu0 %v4496_v35  ;;  %v4506_v35 = vld [vmem:[%s5274_s14 + $0x198] ss:$12 sps:$4 sm:$0xff]  }
 0x184   : > { %2172 = vmatpush1.bf16.msra.mxu0 %v4494_v36 }
 0x185   : > { %2173 = vmatprep.subr.bf16.mxu0 %v4499_v37  ;;  %v4511_v37 = vld [vmem:[%s5274_s14 + $0x1b4] ss:$12 sps:$4 sm:$0xff]  }
 0x188   : > { %2174 = vmatpush1.bf16.msra.mxu0 %v4497_v38  ;;  %v4509_v38 = vld [vmem:[%s5274_s14 + $0x1b0] ss:$12 sps:$4 sm:$0xff]  }
 0x189   : > { %2175 = vmatprep.subr.bf16.mxu0 %v4502_v24 }
 0x18c   : > { %2176 = vmatpush1.bf16.msra.mxu0 %v4500_v25 }
 0x18d   : > { %2186 = vmatprep.subr.bf16.mxu0 %v4505_v26 }
 0x222   : > { %v1472_v50 = vpop.f32.mrb[0].mxu0  ;;  %v1554_v51 = vpop.f32.mrb[0].mxu1 }
 0x223   : > { %v4162_v52 = vadd.f32 %v1472_v50, %v744_v46  ;;  %v4164_v53 = vadd.f32 %v1554_v51, %v752_v47  ;;  %v1474_v54 = vpop.f32.mrb[1].mxu0  ;;  %v1556_v55 = vpop.f32.mrb[1].mxu1  ;;  %v4515_v46 = vld [vmem:[%s5274_s14 + $0x1e0] ss:$12 sps:$4 sm:$0xff]   ;;  %v4520_v47 = vld [vmem:[%s5274_s14 + $0x1fc] ss:$12 sps:$4 sm:$0xff]  }
 0x224   : > { %v4163_v56 = vadd.f32 %v1474_v54, %v748_v48  ;;  %v4165_v57 = vadd.f32 %v1556_v55, %v756_v49  ;;  %v1476_v58 = vpop.f32.mrb[2].mxu0  ;;  %v1558_v59 = vpop.f32.mrb[2].mxu1  ;;  %v4518_v48 = vld [vmem:[%s5274_s14 + $0x1f8] ss:$12 sps:$4 sm:$0xff]   ;;  %v4523_v49 = vld [vmem:[%s5274_s14 + $0x214] ss:$12 sps:$4 sm:$0xff]  }
 0x225   : > { %v1561_v60 = vmul.f32 -1.702, %v4162_v52  ;;  %v1563_v61 = vmul.f32 -1.702, %v4164_v53  ;;  %v1477_v62 = vpop.f32.mrb[3].mxu0  ;;  %v1559_v63 = vpop.f32.mrb[3].mxu1 }
 0x226   : > { %v1562_v0 = vmul.f32 -1.702, %v4163_v56  ;;  %v1564_v1 = vmul.f32 -1.702, %v4165_v57  ;;  %v4521_v50 = vld [vmem:[%s5274_s14 + $0x210] ss:$12 sps:$4 sm:$0xff]  }
 0x227   : > { %v1565_v2 = vmul.f32 1.442695, %v1561_v60  ;;  %v1569_v3 = vmul.f32 1.442695, %v1563_v61  ;;  %v4526_v51 = vld [vmem:[%s5274_s14 + $0x22c] ss:$12 sps:$4 sm:$0xff]  }
 0x228   : > { %v1567_v4 = vmul.f32 1.442695, %v1562_v0  ;;  %v1571_v5 = vmul.f32 1.442695, %v1564_v1  ;;  %v4527_v54 = vld [vmem:[%s5274_s14 + $0x240] ss:$12 sps:$4 sm:$0xff]  }
 0x229   : > { %4651 = vpow2.f32 %v1565_v2  ;;  %v4532_v55 = vld [vmem:[%s5274_s14 + $0x25c] ss:$12 sps:$4 sm:$0xff]   ;;  %v4538_v59 = vld [vmem:[%s5274_s14 + $0x28c] ss:$12 sps:$4 sm:$0xff]   ;;  %v4541_v61 = vld [vmem:[%s5274_s14 + $0x2a4] ss:$12 sps:$4 sm:$0xff]  }
 0x22a   : > { %4653 = vpow2.f32 %v1569_v3  ;;  %v4533_v58 = vld [vmem:[%s5274_s14 + $0x270] ss:$12 sps:$4 sm:$0xff]   ;;  %v4536_v60 = vld [vmem:[%s5274_s14 + $0x288] ss:$12 sps:$4 sm:$0xff]   ;;  %v4539_v62 = vld [vmem:[%s5274_s14 + $0x2a0] ss:$12 sps:$4 sm:$0xff]  }
 0x22b   : > { %4655 = vpow2.f32 %v1567_v4  ;;  %v4544_v63 = vld [vmem:[%s5274_s14 + $0x2bc] ss:$12 sps:$4 sm:$0xff]   ;;  %v4542_v0 = vld [vmem:[%s5274_s14 + $0x2b8] ss:$12 sps:$4 sm:$0xff]   ;;  %v4547_v1 = vld [vmem:[%s5274_s14 + $0x2d4] ss:$12 sps:$4 sm:$0xff]  }
 0x22c   : > { %4657 = vpow2.f32 %v1571_v5  ;;  %v4545_v2 = vld [vmem:[%s5274_s14 + $0x2d0] ss:$12 sps:$4 sm:$0xff]   ;;  %v4550_v3 = vld [vmem:[%s5274_s14 + $0x2ec] ss:$12 sps:$4 sm:$0xff]   ;;  %v4548_v4 = vld [vmem:[%s5274_s14 + $0x2e8] ss:$12 sps:$4 sm:$0xff]  }
 0x233   : > { %v4652_v6 = vpop.eup %4651 }
 0x234   : > { %v4654_v7 = vpop.eup %4653  ;;  %v1573_v9 = vadd.f32 1.0, %v4652_v6  ;;  %v4551_v6 = vld [vmem:[%s5276_s12] sm:$0xff]  }
 0x235   : > { %v4656_v10 = vpop.eup %4655  ;;  %v1575_v11 = vadd.f32 1.0, %v4654_v7  ;;  %v4552_v7 = vld [vmem:[%s5276_s12 + $0x8] sm:$0xff]  }
 0x236   : > { %v4658_v12 = vpop.eup %4657  ;;  %4659 = vrcp.f32 %v1573_v9  ;;  %v1574_v13 = vadd.f32 1.0, %v4656_v10  ;;  %v4553_v9 = vld [vmem:[%s5276_s12 + $0x10] sm:$0xff]   ;;  %v5539_v10 = vsub.s32 2, %v5464_v40 }
 0x237   : > { %4661 = vrcp.f32 %v1575_v11  ;;  %v1576_v14 = vadd.f32 1.0, %v4658_v12  ;;  %v4554_v11 = vld [vmem:[%s5276_s12 + $0x18] sm:$0xff]  }
 0x238   : > { %4663 = vrcp.f32 %v1574_v13  ;;  %v1820_v12 = vrot.slane %v5475_v42, %v5539_v10  ;;  %v1824_v13 = vrot.slane %v5479_v44, %v5539_v10 }
 0x239   : > { %4665 = vrcp.f32 %v1576_v14 }
 0x240   : > { %v4660_v15 = vpop.eup %4659 }
 0x241   : > { %v4662_v16 = vpop.eup %4661  ;;  %v1585_v20 = vmul.f32 %v4660_v15, %v4162_v52  ;;  %v4524_v52 = vld [vmem:[%s5274_s14 + $0x228] ss:$12 sps:$4 sm:$0xff]  }
 0x242   : > { %v4664_v17 = vpop.eup %4663  ;;  %v1587_v23 = vmul.f32 %v4662_v16, %v4164_v53  ;;  %v4529_v53 = vld [vmem:[%s5274_s14 + $0x244] ss:$12 sps:$4 sm:$0xff]  }
 0x243   : > { %v4666_v18 = vpop.eup %4665  ;;  %v1586_v19 = vmul.f32 %v4664_v17, %v4163_v56  ;;  %v4530_v56 = vld [vmem:[%s5274_s14 + $0x258] ss:$12 sps:$4 sm:$0xff]  }
 0x244   : > { %v1588_v22 = vmul.f32 %v4666_v18, %v4165_v57  ;;  %v4535_v57 = vld [vmem:[%s5274_s14 + $0x274] ss:$12 sps:$4 sm:$0xff]  }
 0x245   : > { %3847 = vmatprep.subr.msk.mxu1 %vm1594_vm0, %v1586_v19 }
 0x246   : > { %3848 = vmatpush1.msk.msra.mxu1 %vm1594_vm0, %v1585_v20 }
 0x247   : > { %3849 = vmatmul.mubr.msk.f32.vlgmr.msra.gmra.mrb[4].mxu1 %vm1590_vm1, %v1589_v21  ;;  %3850 = vmatprep.subr.msk.mxu1 %vm1594_vm0, %v1588_v22 }
 0x248   : > { %3851 = vmatpush1.msk.msra.mxu1 %vm1594_vm0, %v1587_v23  ;;  %1742 = vmatprep.mubr.f32.mxu1 %v4931_v8 }
 0x249   : > { %4083 = vmatprep.subr.bf16.mxu1 %v4931_v8 }
 0x24b   : > { %3852 = vmatmul.mubr.msk.f32.vlgmr.msra.gmra.mrb[6].mxu1 %vm1590_vm1, %v1589_v21 }
 0x24c   : > { %4084 = vmatpush3.bf16.msra.mxu1 %v4551_v6  ;;  %4091 = vmatprep.mubr.msk.bf16.mxu1 %vm4932_vm2, %v4931_v8  ;;  %v5624_v6 = vld [vmem:[%s5847_s8 + $0x38] sm:$0xff] }
 0x24d   : > { %4085 = vmatprep.subr.bf16.mxu1 %v4931_v8 }
 0x250   : > { %4086 = vmatpush3.bf16.msra.mxu1 %v4552_v7 }
 0x251   : > { %4087 = vmatprep.subr.bf16.mxu1 %v4931_v8 }
 0x254   : > { %4088 = vmatpush3.bf16.msra.mxu1 %v4553_v9 }
 0x255   : > { %4089 = vmatprep.subr.bf16.mxu1 %v4931_v8 }
 0x258   : > { %4090 = vmatpush3.bf16.msra.mxu1 %v4554_v11 }
 0x31a   : > { %v1673_v27 = vpop.f32.mrb[4].mxu1 }
 0x31b   : > { %v1675_v28 = vpop.f32.mrb[5].mxu1  ;;  %v1749_v31 = vpack.c.bf16 %v1673_v27, %v1673_v27 }
 0x31c   : > { %v1750_v29 = vpack.c.bf16 %v1675_v28, %v1675_v28  ;;  %v2255_v28 = vsub.s32 3, %v5464_v40 }
 0x31e   : > { %2177 = vmatprep.mubr.bf16.mxu0 %v1750_v29  ;;  %v5500_v33 = vpop.f32.mrb[6].mxu1  ;;  %v2256_v29 = vrot.slane %v5475_v42, %v2255_v28 }
 0x31f   : > { %2178 = vmatmul.mubr.bf16.vlgmr.msra.gmra.mrb[4].mxu0 %v1749_v31  ;;  %v1746_v34 = vpop.f32.mrb[7].mxu1  ;;  %v1751_v5 = vpack.c.bf16 %v5500_v33, %v5500_v33 }
 0x320   : > { %2187 = vmatpush1.bf16.msra.mxu0 %v4503_v30  ;;  %v1752_v36 = vpack.c.bf16 %v1746_v34, %v1746_v34 }
 0x321   : > { %2188 = vmatprep.subr.bf16.mxu0 %v4508_v32 }
 0x322   : > { %2218 = vmatprep.mubr.bf16.mxu0 %v1752_v36 }
 0x324   : > { %2189 = vmatpush1.bf16.msra.mxu0 %v4506_v35 }
 0x325   : > { %2190 = vmatprep.subr.bf16.mxu0 %v4511_v37 }
 0x328   : > { %2191 = vmatpush1.bf16.msra.mxu0 %v4509_v38 }
 0x329   : > { %2192 = vmatprep.subr.bf16.mxu0 %v4514_v39 }
 0x32c   : > { %2193 = vmatpush1.bf16.msra.mxu0 %v4512_v43 }
 0x32d   : > { %2194 = vmatprep.subr.bf16.mxu0 %v4517_v45 }
 0x330   : > { %2195 = vmatpush1.bf16.msra.mxu0 %v4515_v46 }
 0x331   : > { %2196 = vmatprep.subr.bf16.mxu0 %v4520_v47 }
 0x334   : > { %2197 = vmatpush1.bf16.msra.mxu0 %v4518_v48 }
 0x335   : > { %2198 = vmatprep.subr.bf16.mxu0 %v4523_v49 }
 0x338   : > { %2199 = vmatpush1.bf16.msra.mxu0 %v4521_v50 }
 0x339   : > { %2200 = vmatprep.subr.bf16.mxu0 %v4526_v51 }
 0x33c   : > { %2201 = vmatpush1.bf16.msra.mxu0 %v4524_v52 }
 0x33d   : > { %2202 = vmatprep.subr.bf16.mxu0 %v4529_v53 }
 0x340   : > { %2203 = vmatpush1.bf16.msra.mxu0 %v4527_v54  ;;  %v4557_v54 = vld [vmem:[%s5282_s23 + $0x4] ss:$8 sps:$4 sm:$0xff]  }
 0x341   : > { %2204 = vmatprep.subr.bf16.mxu0 %v4532_v55  ;;  %v4555_v55 = vld [vmem:[%s5282_s23] ss:$8 sps:$4 sm:$0xff]   ;;  %2410 = vmatprep.subr.bf16.mxu1 %v4557_v54 }
 0x344   : > { %2205 = vmatpush1.bf16.msra.mxu0 %v4530_v56  ;;  %v4560_v56 = vld [vmem:[%s5282_s23 + $0x14] ss:$8 sps:$4 sm:$0xff]  }
 0x345   : > { %2206 = vmatprep.subr.bf16.mxu0 %v4535_v57  ;;  %v4558_v57 = vld [vmem:[%s5282_s23 + $0x10] ss:$8 sps:$4 sm:$0xff]  }
 0x348   : > { %2207 = vmatpush1.bf16.msra.mxu0 %v4533_v58  ;;  %v4563_v58 = vld [vmem:[%s5282_s23 + $0x24] ss:$8 sps:$4 sm:$0xff]  }
 0x349   : > { %2208 = vmatprep.subr.bf16.mxu0 %v4538_v59  ;;  %v4561_v59 = vld [vmem:[%s5282_s23 + $0x20] ss:$8 sps:$4 sm:$0xff]  }
 0x34c   : > { %2209 = vmatpush1.bf16.msra.mxu0 %v4536_v60  ;;  %v4566_v60 = vld [vmem:[%s5282_s23 + $0x34] ss:$8 sps:$4 sm:$0xff]  }
 0x34d   : > { %2210 = vmatprep.subr.bf16.mxu0 %v4541_v61  ;;  %v4564_v61 = vld [vmem:[%s5282_s23 + $0x30] ss:$8 sps:$4 sm:$0xff]  }
 0x350   : > { %2211 = vmatpush1.bf16.msra.mxu0 %v4539_v62  ;;  %v4934_v62 = vmov 0  }
 0x351   : > { %2212 = vmatprep.subr.bf16.mxu0 %v4544_v63  ;;  %v5575_v63 = vld [vmem:[%s5847_s8] sm:$0xff] }
 0x354   : > { %2213 = vmatpush1.bf16.msra.mxu0 %v4542_v0  ;;  %v5582_v0 = vld [vmem:[%s5847_s8 + $0x8] sm:$0xff] }
 0x355   : > { %2214 = vmatprep.subr.bf16.mxu0 %v4547_v1  ;;  %v5587_v1 = vld [vmem:[%s5847_s8 + $0x10] sm:$0xff] }
 0x358   : > { %2215 = vmatpush1.bf16.msra.mxu0 %v4545_v2  ;;  %v5594_v2 = vld [vmem:[%s5847_s8 + $0x30] sm:$0xff] }
 0x359   : > { %2216 = vmatprep.subr.bf16.mxu0 %v4550_v3  ;;  %v5601_v3 = vld [vmem:[%s5847_s8 + $0x18] sm:$0xff] }
 0x35c   : > { %2217 = vmatpush1.bf16.msra.mxu0 %v4548_v4  ;;  %v5610_v4 = vld [vmem:[%s5847_s8 + $0x20] sm:$0xff] }
 0x35f   : > { %2219 = vmatmul.mubr.bf16.vlgmr.msra.gmra.mrb[4].mxu0 %v1751_v5  ;;  %v5617_v5 = vld [vmem:[%s5847_s8 + $0x28] sm:$0xff] }
 0x360   : > { %3104 = vmatprep.mubr.bf16.mxu0 %v4934_v62 }
 0x432   : > { %v2220_v14 = vpop.f32.mrb[4].mxu0 }
 0x433   : > { %v4166_v15 = vadd.f32 %v2220_v14, %v1820_v12  ;;  %v2222_v16 = vpop.f32.mrb[5].mxu0  ;;  %v2350_v12 = vsub.s32 4, %v5464_v40 }
 0x434   : > { %v2224_v17 = vpop.f32.mrb[6].mxu0  ;;  %v4167_v18 = vadd.f32 %v2222_v16, %v1824_v13  ;;  %v2355_v13 = vsub.s32 5, %v5464_v40 }
 0x435   : > { %v2225_v19 = vpop.f32.mrb[7].mxu0  ;;  %v2228_v20 = vrot.slane %v4166_v15, 6  ;;  %v2351_v14 = vrot.slane %v5475_v42, %v2350_v12 }
 0x436   : > { %v2235_v21 = vrot.slane %v4167_v18, 2  ;;  %v2233_v24 = vrot.slane %v4167_v18, 4  ;;  %v2356_v17 = vrot.slane %v5475_v42, %v2355_v13 }
 0x437   : > { %2229 = vrot.lane.b32.xlu0 %v2228_v20, %s4933_s26 }
 0x43b   : > { %2236 = vrot.lane.b32.xlu0 %v2235_v21, %s4933_s26 }
 0x43f   : > { %2459 = vrot.lane.b32.xlu0 %v5575_v63, %s4933_s26 }
 0x443   : > { %2463 = vrot.lane.b32.xlu0 %v5587_v1, %s4933_s26 }
 0x447   : > { %2465 = vrot.lane.b32.xlu0 %v5601_v3, %s4933_s26 }
 0x44b   : > { %2467 = vrot.lane.b32.xlu0 %v5610_v4, %s4933_s26 }
 0x44f   : > { %2469 = vrot.lane.b32.xlu0 %v5617_v5, %s4933_s26 }
 0x453   : > { %2473 = vrot.lane.b32.xlu0 %v5624_v6, %s4933_s26 }
 0x4a9   : > { %v2230_v22 = vpop.permute.xlu0 %2229 }
 0x4aa   : > { %v2240_v23 = vsel %vm2239_vm3, %v4166_v15, %v2230_v22 }
 0x4ab   : > { %v2242_v25 = vsel %vm2241_vm4, %v2240_v23, %v2233_v24 }
 0x4ad   : > { %v2237_v44 = vpop.permute.xlu0 %2236 }
 0x4ae   : > { %v5552_v26 = vsel %vm1594_vm0, %v2242_v25, %v2237_v44 }
 0x4af   : > { %v2244_v27 = vpack.c.bf16 %v5552_v26, %v5552_v26 }
 0x4b1   : > { %4092 = vmatmul.mubr.msk.bf16.vlgmr.msra.gmra.mrb[8].mxu1 %vm2281_vm5, %v2244_v27  ;;  %v2460_v21 = vpop.permute.xlu0 %2459 }
 0x4b2   : > { %2411 = vmatpush1.bf16.msra.mxu1 %v4555_v55  ;;  %2442 = vmatprep.mubr.bf16.mxu1 %v4934_v62 }
 0x4b3   : > { %2412 = vmatprep.subr.bf16.mxu1 %v4560_v56 }
 0x4b5   : > { %v2464_v22 = vpop.permute.xlu0 %2463 }
 0x4b6   : > { %2413 = vmatpush1.bf16.msra.mxu1 %v4558_v57 }
 0x4b7   : > { %2414 = vmatprep.subr.bf16.mxu1 %v4563_v58  ;;  %v596_v58 = vld [vmem:[%s5847_s8 + $0x40] sm:$0xff] }
 0x4b9   : > { %v2466_v23 = vpop.permute.xlu0 %2465 }
 0x4ba   : > { %2415 = vmatpush1.bf16.msra.mxu1 %v4561_v59  ;;  %v597_v59 = vld [vmem:[%s5847_s8 + $0x48] sm:$0xff] }
 0x4bb   : > { %2416 = vmatprep.subr.bf16.mxu1 %v4566_v60  ;;  %v4935_v60 = vmov 0.0|0.0  }
 0x4bd   : > { %v2468_v24 = vpop.permute.xlu0 %2467 }
 0x4be   : > { %2417 = vmatpush1.bf16.msra.mxu1 %v4564_v61  ;;  %v4151_v61 = vpack.c.bf16 %v597_v59, %v596_v58  ;;  %v2782_v58 = vsel %vm2281_vm5, %v5552_v26, 0.0 }
 0x4bf   : > { %4095 = vmatprep.subr.bf16.mxu1 %v4931_v8 }
 0x4c1   : > { %v2470_v44 = vpop.permute.xlu0 %2469 }
 0x584   : > { %v2319_v30 = vpop.f32.mrb[8].mxu1 }
 0x585   : > { %v2320_v31 = vadd.f32 %v2319_v30, %v2256_v29  ;;  %v4093_v32 = vpop.f32.mrb[9].mxu1  ;;  %v2474_v29 = vpop.permute.xlu0 %2473 }
 0x586   : > { %v2322_v33 = vpop.f32.mrb[10].mxu1 }
 0x587   : > { %v2326_v34 = vmul.f32 0.044715, %v2320_v31  ;;  %v4094_v35 = vpop.f32.mrb[11].mxu1  ;;  %v2325_v45 = vmul.f32 0.5, %v2320_v31 }
 0x589   : > { %v2327_v36 = vmul.f32 %v2326_v34, %v2320_v31 }
 0x58b   : > { %v2328_v37 = vmul.f32 %v2327_v36, %v2320_v31 }
 0x58d   : > { %v2329_v38 = vadd.f32 %v2328_v37, %v2320_v31 }
 0x58f   : > { %v2330_v39 = vmul.f32 0.7978846, %v2329_v38 }
 0x591   : > { %4667 = vtanh.f32 %v2330_v39 }
 0x59b   : > { %v4668_v43 = vpop.eup %4667 }
 0x59c   : > { %v2332_v46 = vadd.f32 1.0, %v4668_v43 }
 0x59e   : > { %v2333_v47 = vmul.f32 %v2332_v46, %v2325_v45 }
 0x5a0   : > { %v2334_v48 = vsel %vm2281_vm5, %v2333_v47, 0.0 }
 0x5a1   : > { %2335 = vadd.xlane.f32.xlu1 %v2334_v48 }
 0x62e   : > { %v2336_v49 = vpop.xlane.xlu1 %2335 }
 0x62f   : > { %v2338_v50 = vmul.f32 0.015625, %v2336_v49 }
 0x631   : > { %v2339_v51 = vsub.f32 %v2333_v47, %v2338_v50 }
 0x633   : > { %v2340_v52 = vmul.f32 %v2339_v51, %v2339_v51 }
 0x635   : > { %v2341_v53 = vsel %vm2281_vm5, %v2340_v52, 0.0 }
 0x636   : > { %2342 = vadd.xlane.f32.xlu1 %v2341_v53 }
 0x647   : > { %2461 = vrot.lane.b32.xlu1 %v5582_v0, %s4933_s26 }
 0x64b   : > { %2471 = vrot.lane.b32.xlu1 %v5594_v2, %s4933_s26 }
 0x6c3   : > { %v2343_v7 = vpop.xlane.xlu1 %2342 }
 0x6c4   : > { %v2344_v9 = vmul.f32 0.015625, %v2343_v7 }
 0x6c6   : > { %v2345_v11 = vadd.f32 1e-05, %v2344_v9  ;;  %v604_v9 = vld [vmem:[%s5847_s8 + $0x80] sm:$0xff] }
 0x6c7   : > { %v2462_v25 = vpop.permute.xlu1 %2461 }
 0x6c8   : > { %4669 = vrsqrt.f32 %v2345_v11 }
 0x6cb   : > { %v2472_v27 = vpop.permute.xlu1 %2471 }
 0x6d2   : > { %v4670_v15 = vpop.eup %4669 }
 0x6d3   : > { %v2347_v16 = vmul.f32 %v4670_v15, %v2339_v51 }
 0x6d5   : > { %v2352_v18 = vmul.f32 %v2351_v14, %v2347_v16 }
 0x6d7   : > { %v2357_v19 = vadd.f32 %v2356_v17, %v2352_v18  ;;  %v598_v17 = vld [vmem:[%s5847_s8 + $0x50] sm:$0xff]  ;;  %v599_v18 = vld [vmem:[%s5847_s8 + $0x58] sm:$0xff] }
 0x6d9   : > { %v2358_v20 = vpack.c.bf16 %v2357_v19, %v2357_v19  ;;  %v4154_v19 = vpack.c.bf16 %v599_v18, %v598_v17 }
 0x6db   : > { %3930 = vmatmul.mubr.msk.bf16.vlgmr.msra.gmra.mrb[12].mxu1 %vm2281_vm5, %v2358_v20  ;;  %v600_v20 = vld [vmem:[%s5847_s8 + $0x60] sm:$0xff] }
 0x6dc   : > { %4103 = vmatprep.mubr.msk.bf16.mxu1 %vm4932_vm2, %v4931_v8 }
 0x7ae   : > { %v2444_v28 = vpop.f32.mrb[12].mxu1 }
 0x7af   : > { %v5635_v30 = vpop.f32.mrb[13].mxu1  ;;  %v2483_v31 = vmul.f32 %v2460_v21, %v2444_v28  ;;  %v2484_v32 = vmul.f32 %v2462_v25, %v2444_v28  ;;  %v2485_v34 = vmul.f32 %v2464_v22, %v2444_v28  ;;  %v2486_v35 = vmul.f32 %v2466_v23, %v2444_v28  ;;  %v601_v21 = vld [vmem:[%s5847_s8 + $0x68] sm:$0xff]  ;;  %v602_v23 = vld [vmem:[%s5847_s8 + $0x70] sm:$0xff] }
 0x7b0   : > { %v2448_v33 = vpop.f32.mrb[14].mxu1  ;;  %v2487_v38 = vmul.f32 %v2468_v24, %v2444_v28  ;;  %v2488_v39 = vmul.f32 %v2470_v44, %v2444_v28  ;;  %v2489_v43 = vmul.f32 %v2472_v27, %v2444_v28  ;;  %v2490_v45 = vmul.f32 %v2474_v29, %v2444_v28  ;;  %v603_v24 = vld [vmem:[%s5847_s8 + $0x78] sm:$0xff] }
 0x7b1   : > { %v2449_v36 = vpop.f32.mrb[15].mxu1  ;;  %v2491_v37 = vpack.c.bf16 %v2484_v32, %v2483_v31  ;;  %v2492_v46 = vpack.c.bf16 %v2486_v35, %v2485_v34  ;;  %v2507_v57 = vpack.c.bf16 %v2444_v28, %v2444_v28  ;;  %v4157_v22 = vpack.c.bf16 %v601_v21, %v600_v20  ;;  %v4577_v20 = vld [vmem:[%s5268_s2 + $0x420] ss:$16 sps:$4 sm:$0xff]   ;;  %v4579_v21 = vld [vmem:[%s5268_s2 + $0x424] ss:$16 sps:$4 sm:$0xff]  }
 0x7b2   : > { %v2493_v47 = vpack.c.bf16 %v2488_v39, %v2487_v38  ;;  %v2494_v48 = vpack.c.bf16 %v2490_v45, %v2489_v43  ;;  %v4160_v25 = vpack.c.bf16 %v603_v24, %v602_v23  ;;  %v2495_v29 = vmul.f32 %v5635_v30, %v5575_v63  ;;  %v4567_v45 = vld [vmem:[%s5284_s9] sm:$0xff]   ;;  %v4582_v23 = vld [vmem:[%s5268_s2 + $0x42c] ss:$16 sps:$4 sm:$0xff]  }
 0x7b3   : > { %2512 = vrot.lane.b32.xlu1 %v2491_v37, %s4933_s26  ;;  %2514 = vrot.lane.b32.xlu0 %v2492_v46, %s4933_s26  ;;  %v2496_v31 = vmul.f32 %v5635_v30, %v5582_v0  ;;  %v2497_v34 = vmul.f32 %v5635_v30, %v5587_v1  ;;  %v2498_v35 = vmul.f32 %v5635_v30, %v5601_v3  ;;  %v4570_v46 = vld [vmem:[%s5284_s9 + $0x18] sm:$0xff]   ;;  %v4585_v24 = vld [vmem:[%s5268_s2 + $0x444] ss:$16 sps:$4 sm:$0xff]  }
 0x7b4   : > { %v2499_v0 = vmul.f32 %v5635_v30, %v5610_v4  ;;  %v2500_v36 = vmul.f32 %v5635_v30, %v5617_v5  ;;  %v2501_v3 = vmul.f32 %v5635_v30, %v5594_v2  ;;  %v2502_v37 = vmul.f32 %v5635_v30, %v5624_v6  ;;  %v4568_v6 = vld [vmem:[%s5284_s9 + $0x8] sm:$0xff]   ;;  %v4569_v30 = vld [vmem:[%s5284_s9 + $0x10] sm:$0xff]  }
 0x7b5   : > { %v2503_v33 = vpack.c.bf16 %v2496_v31, %v2495_v29  ;;  %v2504_v63 = vpack.c.bf16 %v2498_v35, %v2497_v34  ;;  %v4591_v29 = vld [vmem:[%s5268_s2 + $0x464] ss:$16 sps:$4 sm:$0xff]   ;;  %v4592_v31 = vld [vmem:[%s5268_s2 + $0x468] ss:$16 sps:$4 sm:$0xff]   ;;  %v4600_v34 = vld [vmem:[%s5268_s2 + $0x48c] ss:$16 sps:$4 sm:$0xff]  }
 0x7b6   : > { %v2505_v1 = vpack.c.bf16 %v2500_v36, %v2499_v0  ;;  %v2506_v38 = vpack.c.bf16 %v2502_v37, %v2501_v3  ;;  %v4595_v35 = vld [vmem:[%s5268_s2 + $0x480] ss:$16 sps:$4 sm:$0xff]   ;;  %v4603_v0 = vld [vmem:[%s5268_s2 + $0x4a4] ss:$16 sps:$4 sm:$0xff]   ;;  %v4606_v36 = vld [vmem:[%s5268_s2 + $0x4ac] ss:$16 sps:$4 sm:$0xff]  }
 0x7b7   : > { %2516 = vrot.lane.b32.xlu1 %v2493_v47, %s4933_s26  ;;  %2518 = vrot.lane.b32.xlu0 %v2494_v48, %s4933_s26  ;;  %v4604_v3 = vld [vmem:[%s5268_s2 + $0x4a8] ss:$16 sps:$4 sm:$0xff]   ;;  %v4609_v37 = vld [vmem:[%s5268_s2 + $0x4c4] ss:$16 sps:$4 sm:$0xff]  }
 0x825   : > { %v2513_v49 = vpop.permute.xlu1 %2512  ;;  %v2515_v51 = vpop.permute.xlu0 %2514 }
 0x826   : > { %v2524_v50 = vsel %vm2281_vm5, %v2513_v49, 0  ;;  %v2527_v52 = vsel %vm2281_vm5, %v2515_v51, 0 }
 0x827   : > { %4096 = vmatpush3.bf16.xpose.msra.mxu1 %v2524_v50 }
 0x828   : > { %4097 = vmatprep.subr.bf16.mxu1 %v4931_v8 }
 0x829   : > { %v2517_v53 = vpop.permute.xlu1 %2516  ;;  %v2519_v55 = vpop.permute.xlu0 %2518 }
 0x82a   : > { %v2530_v54 = vsel %vm2281_vm5, %v2517_v53, 0  ;;  %v2533_v56 = vsel %vm2281_vm5, %v2519_v55, 0 }
 0x82f   : > { %4098 = vmatpush3.bf16.xpose.msra.mxu1 %v2527_v52  ;;  %v2713_v52 = vsub.s32 6, %v5464_v40 }
 0x830   : > { %4099 = vmatprep.subr.bf16.mxu1 %v4931_v8 }
 0x831   : > { %v2714_v53 = vrot.slane %v5475_v42, %v2713_v52 }
 0x837   : > { %4100 = vmatpush3.bf16.xpose.msra.mxu1 %v2530_v54 }
 0x838   : > { %4101 = vmatprep.subr.bf16.mxu1 %v4931_v8 }
 0x83f   : > { %4102 = vmatpush3.bf16.xpose.msra.mxu1 %v2533_v56 }
 0x840   : > { %4150 = vmatprep.subr.bf16.mxu1 %v4935_v60 }
 0x846   : > { %4104 = vmatmul.mubr.msk.bf16.vlgmr.msra.gmra.mrb[16].mxu1 %vm2281_vm5, %v2507_v57 }
 0x847   : > { %4123 = vmatprep.mubr.msk.f32.mxu1 %vm4932_vm2, %v4931_v8  ;;  %4152 = vmatpush3.bf16.msra.mxu1 %v4151_v61 }
 0x848   : > { %4153 = vmatprep.subr.bf16.mxu1 %v4935_v60 }
 0x84b   : > { %4155 = vmatpush3.bf16.msra.mxu1 %v4154_v19 }
 0x84c   : > { %4156 = vmatprep.subr.bf16.mxu1 %v4935_v60 }
 0x84f   : > { %4158 = vmatpush3.bf16.msra.mxu1 %v4157_v22  ;;  %v4580_v22 = vld [vmem:[%s5268_s2 + $0x428] ss:$16 sps:$4 sm:$0xff]  }
 0x850   : > { %4159 = vmatprep.subr.bf16.mxu1 %v4935_v60 }
 0x853   : > { %4161 = vmatpush3.bf16.msra.mxu1 %v4160_v25  ;;  %v4588_v25 = vld [vmem:[%s5268_s2 + $0x44c] ss:$16 sps:$4 sm:$0xff]  }
 0x854   : > { %4126 = vmatprep.subr.bf16.mxu1 %v4931_v8 }
 0x919   : > { %v2569_v7 = vpop.f32.mrb[16].mxu1 }
 0x91a   : > { %v2575_v11 = vmul.f32 0.35355338, %v2569_v7  ;;  %v4105_v12 = vpop.f32.mrb[17].mxu1  ;;  %v4571_v7 = vld [vmem:[%s5268_s2 + $0x400] ss:$16 sps:$4 sm:$0xff]  }
 0x91b   : > { %v2572_v13 = vpop.f32.mrb[18].mxu1  ;;  %v4576_v12 = vld [vmem:[%s5268_s2 + $0x40c] ss:$16 sps:$4 sm:$0xff]  }
 0x91c   : > { %v4106_v14 = vpop.f32.mrb[19].mxu1  ;;  %v2576_v15 = vadd.f32 %v2575_v11, %v604_v9  ;;  %v4573_v9 = vld [vmem:[%s5268_s2 + $0x404] ss:$16 sps:$4 sm:$0xff]   ;;  %v4574_v11 = vld [vmem:[%s5268_s2 + $0x408] ss:$16 sps:$4 sm:$0xff]   ;;  %3072 = vmatprep.subr.bf16.mxu0 %v4576_v12 }
 0x91d   : > { %3073 = vmatpush1.bf16.msra.mxu0 %v4574_v11  ;;  %v4626_v11 = vld [vmem:[%s5274_s14 + $0x1a0] ss:$12 sps:$4 sm:$0xff]   ;;  %v4627_v12 = vld [vmem:[%s5274_s14 + $0xf8] ss:$12 sps:$4 sm:$0xff]  }
 0x91e   : > { %v2577_v16 = vsel %vm2281_vm5, %v2576_v15, -inf  ;;  %3074 = vmatprep.subr.bf16.mxu0 %v4582_v23  ;;  %v4640_v23 = vld [vmem:[%s5274_s14 + $0x2c0] ss:$12 sps:$4 sm:$0xff]  }
 0x91f   : > { %2578 = vmax.xlane.f32.xlu1 %v2577_v16 }
 0x921   : > { %3075 = vmatpush1.bf16.msra.mxu0 %v4580_v22  ;;  %v4639_v22 = vld [vmem:[%s5274_s14 + $0x140] ss:$12 sps:$4 sm:$0xff]  }
 0x922   : > { %3076 = vmatprep.subr.bf16.mxu0 %v4588_v25  ;;  %v4642_v25 = vld [vmem:[%s5274_s14 + $0x200] ss:$12 sps:$4 sm:$0xff]  }
 0x9ac   : > { %v2579_v44 = vpop.xlane.xlu1 %2578 }
 0x9ad   : > { %v2580_v27 = vsub.f32 %v2576_v15, %v2579_v44  ;;  %v4583_v44 = vld [vmem:[%s5268_s2 + $0x440] ss:$16 sps:$4 sm:$0xff]  }
 0x9af   : > { %v2581_v28 = vmul.f32 1.442695, %v2580_v27  ;;  %v4586_v27 = vld [vmem:[%s5268_s2 + $0x448] ss:$16 sps:$4 sm:$0xff]  }
 0x9b0   : > { %3077 = vmatpush1.bf16.msra.mxu0 %v4586_v27  ;;  %v4644_v27 = vld [vmem:[%s5274_s14 + $0x2d8] ss:$12 sps:$4 sm:$0xff]  }
 0x9b1   : > { %4671 = vpow2.f32 %v2581_v28  ;;  %v4589_v28 = vld [vmem:[%s5268_s2 + $0x460] ss:$16 sps:$4 sm:$0xff]  }
 0x9bb   : > { %v4672_v32 = vpop.eup %4671 }
 0x9bc   : > { %4124 = vmatmul.mubr.msk.f32.vlgmr.msra.gmra.mrb[20].mxu1 %vm2281_vm5, %v4672_v32 }
 0x9bd   : > { %4127 = vmatpush3.bf16.msra.mxu1 %v2503_v33  ;;  %4134 = vmatprep.mubr.msk.bf16.mxu1 %vm4932_vm2, %v4931_v8  ;;  %v4597_v33 = vld [vmem:[%s5268_s2 + $0x484] ss:$16 sps:$4 sm:$0xff]  }
 0x9be   : > { %4128 = vmatprep.subr.bf16.mxu1 %v4931_v8 }
 0x9c1   : > { %4129 = vmatpush3.bf16.msra.mxu1 %v2504_v63  ;;  %v4598_v63 = vld [vmem:[%s5268_s2 + $0x488] ss:$16 sps:$4 sm:$0xff]  }
 0x9c2   : > { %4130 = vmatprep.subr.bf16.mxu1 %v4931_v8 }
 0x9c5   : > { %4131 = vmatpush3.bf16.msra.mxu1 %v2505_v1  ;;  %v4601_v1 = vld [vmem:[%s5268_s2 + $0x4a0] ss:$16 sps:$4 sm:$0xff]  }
 0x9c6   : > { %4132 = vmatprep.subr.bf16.mxu1 %v4931_v8 }
 0x9c9   : > { %4133 = vmatpush3.bf16.msra.mxu1 %v2506_v38  ;;  %v4612_v38 = vld [vmem:[%s5268_s2 + $0x4cc] ss:$16 sps:$4 sm:$0xff]  }
 0x9ca   : > { %4138 = vmatprep.subr.bf16.mxu1 %v4931_v8 }
 0xa8f   : > { %v2652_v4 = vpop.f32.mrb[20].mxu1 }
 0xa90   : > { %4673 = vrcp.f32 %v2652_v4  ;;  %v4125_v5 = vpop.f32.mrb[21].mxu1  ;;  %v4607_v4 = vld [vmem:[%s5268_s2 + $0x4c0] ss:$16 sps:$4 sm:$0xff]  }
 0xa91   : > { %v4610_v5 = vld [vmem:[%s5268_s2 + $0x4c8] ss:$16 sps:$4 sm:$0xff]  }
 0xa9a   : > { %v4674_v39 = vpop.eup %4673 }
 0xa9b   : > { %v2657_v43 = vmul.f32 %v4674_v39, %v4672_v32  ;;  %v4594_v32 = vld [vmem:[%s5268_s2 + $0x46c] ss:$16 sps:$4 sm:$0xff]   ;;  %v4615_v39 = vld [vmem:[%s5268_s2 + $0x4e4] ss:$16 sps:$4 sm:$0xff]  }
 0xa9c   : > { %3078 = vmatprep.subr.bf16.mxu0 %v4594_v32  ;;  %v4648_v32 = vld [vmem:[%s5274_s14 + $0x2f0] ss:$12 sps:$4 sm:$0xff]  }
 0xa9d   : > { %v2658_v2 = vpack.c.bf16 %v2657_v43, %v2657_v43  ;;  %3079 = vmatpush1.bf16.msra.mxu0 %v4592_v31  ;;  %v4618_v43 = vld [vmem:[%s5268_s2 + $0x4ec] ss:$16 sps:$4 sm:$0xff]  }
 0xa9e   : > { %3080 = vmatprep.subr.bf16.mxu0 %v4600_v34  ;;  %v4647_v31 = vld [vmem:[%s5274_s14 + $0x170] ss:$12 sps:$4 sm:$0xff]  }
 0xa9f   : > { %4135 = vmatmul.mubr.msk.bf16.vlgmr.msra.gmra.mrb[24].mxu1 %vm2281_vm5, %v2658_v2  ;;  %v4616_v2 = vld [vmem:[%s5268_s2 + $0x4e8] ss:$16 sps:$4 sm:$0xff]   ;;  %v4650_v34 = vld [vmem:[%s5274_s14 + $0x230] ss:$12 sps:$4 sm:$0xff]  }
 0xaa0   : > { %4139 = vmatpush3.bf16.msra.mxu1 %v4567_v45  ;;  %4146 = vmatprep.mubr.msk.bf16.mxu1 %vm4932_vm2, %v4931_v8  ;;  %v4613_v45 = vld [vmem:[%s5268_s2 + $0x4e0] ss:$16 sps:$4 sm:$0xff]   ;;  %s3718_s2 = sshll.u32 %s5880_s13, 3 }
 0xaa1   : > { %4140 = vmatprep.subr.bf16.mxu1 %v4931_v8  ;;  %3081 = vmatpush1.bf16.msra.mxu0 %v4598_v63  ;;  %v4685_v63 = vld [vmem:[%s5469_s17] sm:$0xff] }
 0xaa2   : > { %3082 = vmatprep.subr.bf16.mxu0 %v4606_v36  ;;  %v4686_v36 = vld [vmem:[%s5469_s17 + $0x10] sm:$0xff] }
 0xaa4   : > { %4141 = vmatpush3.bf16.msra.mxu1 %v4568_v6 }
 0xaa5   : > { %4142 = vmatprep.subr.bf16.mxu1 %v4931_v8  ;;  %3083 = vmatpush1.bf16.msra.mxu0 %v4604_v3  ;;  %v4687_v3 = vld [vmem:[%s5469_s17 + $0x8] sm:$0xff] }
 0xaa6   : > { %3084 = vmatprep.subr.bf16.mxu0 %v4612_v38  ;;  %v4688_v38 = vld [vmem:[%s5469_s17 + $0x18] sm:$0xff] }
 0xaa8   : > { %4143 = vmatpush3.bf16.msra.mxu1 %v4569_v30 }
 0xaa9   : > { %4144 = vmatprep.subr.bf16.mxu1 %v4931_v8  ;;  %v5718_v8 = vld [vmem:[%s5469_s17 + $0x20] sm:$0x7]  ;;  %3085 = vmatpush1.bf16.msra.mxu0 %v4610_v5  ;;  %s5873_s17 = sld [smem:[#allocation21_spill]] }
 0xaaa   : > { %v5722_v57 = vrot.slane %v5718_v8, %v5539_v10  ;;  %3086 = vmatprep.subr.bf16.mxu0 %v4618_v43 }
 0xaac   : > { %4145 = vmatpush3.bf16.msra.mxu1 %v4570_v46 }
 0xaad   : > { %3031 = vmatprep.subr.bf16.mxu1 %v4573_v9  ;;  %3087 = vmatpush1.bf16.msra.mxu0 %v4616_v2  ;;  %v4625_v9 = vld [vmem:[%s5274_s14 + $0x20] ss:$12 sps:$4 sm:$0xff]  }
 0xaaf   : > { %s581_s11 = scalar_lea.vmem %s5873_s17, %s3718_s2 }
 0xb72   : > { %v2696_v47 = vpop.f32.mrb[24].mxu1 }
 0xb73   : > { %v2702_v48 = vpack.c.bf16 %v2696_v47, %v2696_v47  ;;  %v4136_v49 = vpop.f32.mrb[25].mxu1 }
 0xb74   : > { %v2699_v50 = vpop.f32.mrb[26].mxu1 }
 0xb75   : > { %v4137_v51 = vpop.f32.mrb[27].mxu1  ;;  %4147 = vmatmul.mubr.msk.bf16.vlgmr.msra.gmra.mrb[28].mxu1 %vm2281_vm5, %v2702_v48 }
 0xb76   : > { %3063 = vmatprep.mubr.bf16.mxu1 %v4934_v62  ;;  %3032 = vmatpush1.bf16.msra.mxu1 %v4571_v7  ;;  %v2814_v51 = vsub.s32 7, %v5464_v40  ;;  %v4624_v7 = vld [vmem:[%s5274_s14 + $0x260] ss:$12 sps:$4 sm:$0xff]  }
 0xb77   : > { %3033 = vmatprep.subr.bf16.mxu1 %v4579_v21  ;;  %v4638_v21 = vld [vmem:[%s5274_s14 + $0x1e8] ss:$12 sps:$4 sm:$0xff]  }
 0xb78   : > { %v2815_v52 = vrot.slane %v5475_v42, %v2814_v51  ;;  %v4621_v42 = vld [vmem:[%s5274_s14 + $0x8] ss:$12 sps:$4 sm:$0xff]  }
 0xb7a   : > { %3034 = vmatpush1.bf16.msra.mxu1 %v4577_v20  ;;  %v4637_v20 = vld [vmem:[%s5274_s14 + $0x68] ss:$12 sps:$4 sm:$0xff]  }
 0xb7b   : > { %3035 = vmatprep.subr.bf16.mxu1 %v4585_v24  ;;  %v4641_v24 = vld [vmem:[%s5274_s14 + $0x80] ss:$12 sps:$4 sm:$0xff]  }
 0xb7e   : > { %3036 = vmatpush1.bf16.msra.mxu1 %v4583_v44  ;;  %v4643_v44 = vld [vmem:[%s5274_s14 + $0x158] ss:$12 sps:$4 sm:$0xff]  }
 0xb7f   : > { %3037 = vmatprep.subr.bf16.mxu1 %v4591_v29  ;;  %v4646_v29 = vld [vmem:[%s5274_s14 + $0x218] ss:$12 sps:$4 sm:$0xff]  }
 0xb82   : > { %3038 = vmatpush1.bf16.msra.mxu1 %v4589_v28  ;;  %v4645_v28 = vld [vmem:[%s5274_s14 + $0x98] ss:$12 sps:$4 sm:$0xff]  }
 0xb83   : > { %3039 = vmatprep.subr.bf16.mxu1 %v4597_v33  ;;  %v4649_v33 = vld [vmem:[%s5274_s14 + $0xb0] ss:$12 sps:$4 sm:$0xff]  }
 0xb86   : > { %3040 = vmatpush1.bf16.msra.mxu1 %v4595_v35  ;;  %v5809_v35 = vsub.s32 1, %v5464_v40 }
 0xb87   : > { %3041 = vmatprep.subr.bf16.mxu1 %v4603_v0 }
 0xb88   : > { %v2858_v0 = vrot.slane %v4685_v63, %v5809_v35  ;;  %v3220_v63 = vrot.slane %v5718_v8, %v5809_v35 }
 0xb8a   : > { %3042 = vmatpush1.bf16.msra.mxu1 %v4601_v1  ;;  %v2866_v1 = vrot.slane %v4686_v36, %v5809_v35 }
 0xb8b   : > { %3043 = vmatprep.subr.bf16.mxu1 %v4609_v37  ;;  %v2862_v37 = vrot.slane %v4687_v3, %v5809_v35 }
 0xb8e   : > { %3044 = vmatpush1.bf16.msra.mxu1 %v4607_v4  ;;  %v2870_v4 = vrot.slane %v4688_v38, %v5809_v35 }
 0xb8f   : > { %3045 = vmatprep.subr.bf16.mxu1 %v4615_v39 }
 0xb92   : > { %3046 = vmatpush1.bf16.msra.mxu1 %v4613_v45 }
 0xc48   : > { %v2776_v54 = vpop.f32.mrb[28].mxu1 }
 0xc49   : > { %v2777_v55 = vadd.f32 %v2776_v54, %v2714_v53  ;;  %v4148_v56 = vpop.f32.mrb[29].mxu1 }
 0xc4a   : > { %v2779_v62 = vpop.f32.mrb[30].mxu1 }
 0xc4b   : > { %v5726_v59 = vadd.f32 %v2782_v58, %v2777_v55  ;;  %v4149_v60 = vpop.f32.mrb[31].mxu1  ;;  %v2820_v55 = vrot.slane %v5718_v8, %v5472_v41  ;;  %v4619_v62 = vld [vmem:[%s5274_s14 + $0xc8] ss:$12 sps:$4 sm:$0xff]   ;;  %v4623_v41 = vld [vmem:[%s5274_s14 + $0xe0] ss:$12 sps:$4 sm:$0xff]  }
 0xc4c   : > { %v4620_v60 = vld [vmem:[%s5274_s14 + $0x248] ss:$12 sps:$4 sm:$0xff]   ;;  %4039 = vmatprep.subr.bf16.mxu1 %v4619_v62 }
 0xc4d   : > { %v2792_v61 = vmul.f32 %v5722_v57, %v5726_v59  ;;  %4061 = vmatprep.subr.bf16.mxu0 %v4620_v60 }
 0xc4f   : > { %2793 = vadd.xlane.f32.xlu0 %v2792_v61  ;;  %v4622_v61 = vld [vmem:[%s5274_s14 + $0x188] ss:$12 sps:$4 sm:$0xff]  }
 0xc53   : > { %2784 = vadd.xlane.f32.xlu0 %v5726_v59 }
 0xcdc   : > { %v2794_v10 = vpop.xlane.xlu0 %2793 }
 0xcdd   : > { %v2795_v26 = vmul.f32 0.0078125, %v2794_v10  ;;  %v4628_v10 = vld [vmem:[%s5274_s14 + $0x278] ss:$12 sps:$4 sm:$0xff]  }
 0xcdf   : > { %v2796_v14 = vmul.f32 %v2795_v26, %v5722_v57  ;;  %v4629_v26 = vld [vmem:[%s5274_s14 + $0x38] ss:$12 sps:$4 sm:$0xff]  }
 0xce0   : > { %v2785_v13 = vpop.xlane.xlu0 %2784 }
 0xce1   : > { %v2787_v15 = vmul.f32 0.0078125, %v2785_v13  ;;  %v4630_v13 = vld [vmem:[%s5274_s14 + $0x1b8] ss:$12 sps:$4 sm:$0xff]  }
 0xce3   : > { %v2797_v16 = vadd.f32 %v2796_v14, %v2787_v15  ;;  %v4631_v14 = vld [vmem:[%s5274_s14 + $0x110] ss:$12 sps:$4 sm:$0xff]  }
 0xce4   : > { %v4632_v15 = vld [vmem:[%s5274_s14 + $0x290] ss:$12 sps:$4 sm:$0xff]  }
 0xce5   : > { %v5737_v17 = vsub.f32 %v5726_v59, %v2797_v16  ;;  %v4633_v16 = vld [vmem:[%s5274_s14 + $0x50] ss:$12 sps:$4 sm:$0xff]  }
 0xce7   : > { %v2799_v18 = vmul.f32 %v5737_v17, %v5737_v17 }
 0xce9   : > { %2800 = vadd.xlane.f32.xlu0 %v2799_v18  ;;  %v2803_v19 = vmul.f32 %v2799_v18, %v5722_v57  ;;  %v4635_v18 = vld [vmem:[%s5274_s14 + $0x128] ss:$12 sps:$4 sm:$0xff]  }
 0xceb   : > { %2804 = vadd.xlane.f32.xlu1 %v2803_v19  ;;  %v4636_v19 = vld [vmem:[%s5274_s14 + $0x2a8] ss:$12 sps:$4 sm:$0xff]  }
 0xd76   : > { %v2801_v6 = vpop.xlane.xlu0 %2800 }
 0xd77   : > { %v2802_v47 = vmul.f32 0.0078125, %v2801_v6 }
 0xd78   : > { %v2805_v30 = vpop.xlane.xlu1 %2804 }
 0xd79   : > { %v2806_v46 = vmul.f32 0.0078125, %v2805_v30 }
 0xd7b   : > { %v2807_v48 = vmul.f32 %v2806_v46, %v5722_v57 }
 0xd7d   : > { %v2808_v49 = vadd.f32 %v2807_v48, %v2802_v47 }
 0xd7f   : > { %v2809_v50 = vadd.f32 1e-05, %v2808_v49 }
 0xd81   : > { %4675 = vrsqrt.f32 %v2809_v50 }
 0xd8b   : > { %v4676_v53 = vpop.eup %4675 }
 0xd8c   : > { %v2811_v54 = vmul.f32 %v4676_v53, %v5737_v17  ;;  %v4634_v17 = vld [vmem:[%s5274_s14 + $0x1d0] ss:$12 sps:$4 sm:$0xff]  }
 0xd8e   : > { %v2816_v56 = vmul.f32 %v2815_v52, %v2811_v54 }
 0xd90   : > { %v2821_v57 = vadd.f32 %v2820_v55, %v2816_v56 }
 0xd92   : > { %v2822_v58 = vpack.c.bf16 %v2821_v57, %v2821_v57 }
 0xd94   : > { %3064 = vmatmul.mubr.bf16.vlgmr.msra.gmra.mrb[32].mxu1 %v2822_v58  ;;  %3105 = vmatmul.mubr.bf16.vlgmr.msra.gmra.mrb[8].mxu0 %v2822_v58 }
 0xd95   : > { %4040 = vmatpush3.bf16.msra.mxu1 %v4621_v42  ;;  %4062 = vmatpush3.bf16.msra.mxu0 %v4622_v61 }
 0xd96   : > { %4041 = vmatprep.subr.bf16.mxu1 %v4623_v41  ;;  %4063 = vmatprep.subr.bf16.mxu0 %v4624_v7 }
 0xd99   : > { %4042 = vmatpush3.bf16.msra.mxu1 %v4625_v9  ;;  %4064 = vmatpush3.bf16.msra.mxu0 %v4626_v11 }
 0xd9a   : > { %4043 = vmatprep.subr.bf16.mxu1 %v4627_v12  ;;  %4065 = vmatprep.subr.bf16.mxu0 %v4628_v10 }
 0xd9d   : > { %4044 = vmatpush3.bf16.msra.mxu1 %v4629_v26  ;;  %4066 = vmatpush3.bf16.msra.mxu0 %v4630_v13 }
 0xd9e   : > { %4045 = vmatprep.subr.bf16.mxu1 %v4631_v14  ;;  %4067 = vmatprep.subr.bf16.mxu0 %v4632_v15 }
 0xda1   : > { %4046 = vmatpush3.bf16.msra.mxu1 %v4633_v16  ;;  %4068 = vmatpush3.bf16.msra.mxu0 %v4634_v17 }
 0xda2   : > { %4047 = vmatprep.subr.bf16.mxu1 %v4635_v18  ;;  %4069 = vmatprep.subr.bf16.mxu0 %v4636_v19 }
 0xda5   : > { %4048 = vmatpush3.bf16.msra.mxu1 %v4637_v20  ;;  %4070 = vmatpush3.bf16.msra.mxu0 %v4638_v21 }
 0xda6   : > { %4049 = vmatprep.subr.bf16.mxu1 %v4639_v22  ;;  %4071 = vmatprep.subr.bf16.mxu0 %v4640_v23 }
 0xda9   : > { %4050 = vmatpush3.bf16.msra.mxu1 %v4641_v24  ;;  %4072 = vmatpush3.bf16.msra.mxu0 %v4642_v25 }
 0xdaa   : > { %4051 = vmatprep.subr.bf16.mxu1 %v4643_v44  ;;  %4073 = vmatprep.subr.bf16.mxu0 %v4644_v27 }
 0xdad   : > { %4052 = vmatpush3.bf16.msra.mxu1 %v4645_v28  ;;  %4074 = vmatpush3.bf16.msra.mxu0 %v4646_v29 }
 0xdae   : > { %4053 = vmatprep.subr.bf16.mxu1 %v4647_v31  ;;  %4075 = vmatprep.subr.bf16.mxu0 %v4648_v32 }
 0xdb1   : > { %4054 = vmatpush3.bf16.msra.mxu1 %v4649_v33  ;;  %4076 = vmatpush3.bf16.msra.mxu0 %v4650_v34 }
 0xe67   : > { %v3065_v5 = vpop.f32.mrb[32].mxu1  ;;  %v3106_v39 = vpop.f32.mrb[8].mxu0 }
 0xe68   : > { %v3066_v43 = vadd.f32 %v3065_v5, %v2858_v0  ;;  %v3107_v45 = vadd.f32 %v3106_v39, %v2866_v1  ;;  %v3067_v2 = vpop.f32.mrb[33].mxu1  ;;  %v3108_v6 = vpop.f32.mrb[9].mxu0 }
 0xe69   : > { %v3068_v40 = vadd.f32 %v3067_v2, %v2862_v37  ;;  %v3109_v30 = vadd.f32 %v3108_v6, %v2870_v4  ;;  %v3069_v46 = vpop.f32.mrb[34].mxu1  ;;  %v3110_v47 = vpop.f32.mrb[10].mxu0 }
 0xe6a   : > { %v3117_v48 = vmul.f32 0.044715, %v3066_v43  ;;  %v3119_v49 = vmul.f32 0.044715, %v3107_v45  ;;  %v3070_v50 = vpop.f32.mrb[35].mxu1  ;;  %v3111_v51 = vpop.f32.mrb[11].mxu0 }
 0xe6b   : > { %v3118_v52 = vmul.f32 0.044715, %v3068_v40  ;;  %v3120_v53 = vmul.f32 0.044715, %v3109_v30  ;;  %v3113_v15 = vmul.f32 0.5, %v3066_v43  ;;  %v3114_v18 = vmul.f32 0.5, %v3068_v40 }
 0xe6c   : > { %v3121_v54 = vmul.f32 %v3117_v48, %v3066_v43  ;;  %v3123_v55 = vmul.f32 %v3119_v49, %v3107_v45  ;;  %v3116_v21 = vmul.f32 0.5, %v3109_v30  ;;  %v3115_v25 = vmul.f32 0.5, %v3107_v45 }
 0xe6d   : > { %v3122_v56 = vmul.f32 %v3118_v52, %v3068_v40  ;;  %v3124_v57 = vmul.f32 %v3120_v53, %v3109_v30 }
 0xe6e   : > { %v3125_v58 = vmul.f32 %v3121_v54, %v3066_v43  ;;  %v3127_v62 = vmul.f32 %v3123_v55, %v3107_v45 }
 0xe6f   : > { %v3126_v60 = vmul.f32 %v3122_v56, %v3068_v40  ;;  %v3128_v42 = vmul.f32 %v3124_v57, %v3109_v30 }
 0xe70   : > { %v3129_v61 = vadd.f32 %v3125_v58, %v3066_v43  ;;  %v3131_v41 = vadd.f32 %v3127_v62, %v3107_v45 }
 0xe71   : > { %v3130_v7 = vadd.f32 %v3126_v60, %v3068_v40  ;;  %v3132_v9 = vadd.f32 %v3128_v42, %v3109_v30 }
 0xe72   : > { %v3133_v11 = vmul.f32 0.7978846, %v3129_v61  ;;  %v3135_v26 = vmul.f32 0.7978846, %v3131_v41 }
 0xe73   : > { %v3134_v12 = vmul.f32 0.7978846, %v3130_v7  ;;  %v3136_v10 = vmul.f32 0.7978846, %v3132_v9 }
 0xe74   : > { %4677 = vtanh.f32 %v3133_v11 }
 0xe75   : > { %4679 = vtanh.f32 %v3134_v12 }
 0xe76   : > { %4681 = vtanh.f32 %v3136_v10 }
 0xe77   : > { %4683 = vtanh.f32 %v3135_v26 }
 0xe7e   : > { %v4678_v13 = vpop.eup %4677 }
 0xe7f   : > { %v4680_v14 = vpop.eup %4679  ;;  %v3141_v16 = vadd.f32 1.0, %v4678_v13 }
 0xe80   : > { %v4682_v17 = vpop.eup %4681  ;;  %v3142_v19 = vadd.f32 1.0, %v4680_v14 }
 0xe81   : > { %v4684_v20 = vpop.eup %4683  ;;  %v3144_v22 = vadd.f32 1.0, %v4682_v17  ;;  %v3145_v23 = vmul.f32 %v3141_v16, %v3113_v15 }
 0xe82   : > { %v3146_v24 = vmul.f32 %v3142_v19, %v3114_v18  ;;  %v3143_v44 = vadd.f32 1.0, %v4684_v20 }
 0xe83   : > { %v3148_v27 = vmul.f32 %v3144_v22, %v3116_v21  ;;  %v3149_v32 = vpack.c.bf16 %v3145_v23, %v3145_v23 }
 0xe84   : > { %v3150_v28 = vpack.c.bf16 %v3146_v24, %v3146_v24  ;;  %v3147_v29 = vmul.f32 %v3143_v44, %v3115_v25 }
 0xe85   : > { %v3152_v31 = vpack.c.bf16 %v3148_v27, %v3148_v27 }
 0xe86   : > { %3445 = vmatprep.mubr.bf16.mxu1 %v3150_v28  ;;  %v3151_v33 = vpack.c.bf16 %v3147_v29, %v3147_v29 }
 0xe87   : > { %3485 = vmatprep.mubr.bf16.mxu0 %v3152_v31  ;;  %3446 = vmatmul.mubr.bf16.vlgmr.msra.gmra.mrb[36].mxu1 %v3149_v32 }
 0xe88   : > { %3486 = vmatmul.mubr.bf16.vlgmr.msra.gmra.mrb[12].mxu0 %v3151_v33 }
 0xf5a   : > { %v4055_v34 = vpop.f32.mrb[36].mxu1 }
 0xf5b   : > { %v4077_v0 = vpop.f32.mrb[12].mxu0  ;;  %v4056_v36 = vpop.f32.mrb[37].mxu1 }
 0xf5c   : > { %v4057_v1 = vadd.f32 %v4056_v36, %v4055_v34  ;;  %v4078_v3 = vpop.f32.mrb[13].mxu0  ;;  %v4058_v37 = vpop.f32.mrb[38].mxu1 }
 0xf5d   : > { %v4079_v38 = vadd.f32 %v4078_v3, %v4077_v0  ;;  %v4080_v4 = vpop.f32.mrb[14].mxu0  ;;  %v4059_v5 = vpop.f32.mrb[39].mxu1 }
 0xf5e   : > { %v3448_v39 = vadd.f32 %v4057_v1, %v3220_v63  ;;  %v4081_v43 = vpop.f32.mrb[15].mxu0 }
 0xf60   : > { %v3488_v45 = vadd.f32 %v4079_v38, %v3448_v39 }
 0xf62   : > { %v3493_v2 = vadd.f32 %v3488_v45, %v5726_v59 }
 0xf64   : > { %3494 = vst [vmem:[%s581_s11] sm:$0xff] %v3493_v2 }
 0xf65 PF: > { %s5874_s12 = sld [smem:[#allocation17_spill]]  ;;  %s5875_s26 = sld [smem:[#allocation16_spill]] }
 0xf66   : > { %s5876_s11 = sld [smem:[#allocation18_spill]]  ;;  %s5877_s30 = smov %s4907_s10 }
 0xf6b   : > { %p28_p0 = scmp.ge.s32.totalorder %s5874_s12, 4   ;;  %s5878_s10 = smov %s5875_s26 }
 0xf6d   :  { %30 = sbr.rel (!%p28_p0) target bundleno = 13 (0xd), region = 163 }
 0xf74   :  { %3514 = vsyncpa [#allocation3], 1 }
 0xf75   :  { %3516 = vsyncpa [#allocation3 + $0x1], 1 }
 0xf76   :  { %3517 = vsyncpa [#allocation5], 1 }
 0xf77   :  { %3519 = vsyncpa [#allocation5 + $0x1], 1 }
 0xf78   :  { %3520 = vsyncpa [#allocation8], 1 }
 0xf79   :  { %3522 = vsyncpa [#allocation8 + $0x1], 1 }
 0xf7a   :  { %3523 = vsyncpa [#allocation11], 1 }
 0xf7b   :  { %3525 = vsyncpa [#allocation11 + $0x1], 1 }

</bundles_post_ra>
